<compile_context>
chip_gen: v7x
topology: tpu7x:2x2x1
jax: 0.10.0
libtpu: 0.0.40
codegen_flags: <defaults>
</compile_context>

<pallas_src>
import jax
import jax.numpy as jnp
from jax.experimental import pallas as pl
from jax.experimental.pallas import tpu as pltpu

# ----------------------------- synthetic config ------------------------------
VOCAB = 256   # byte vocabulary
D     = 32    # hidden size
L     = 2     # transformer layers
NH    = 4     # attention heads
HD    = D // NH
MLP   = 64    # feed-forward hidden
SEQ   = 8     # sequence length of example inputs
BATCH = 2

# vec_d row layout: per layer l -> [5l+0]=ln1_g [5l+1]=ln1_b [5l+2]=ln2_g
# [5l+3]=ln2_b [5l+4]=mlp_out_bias ; rows [5L]=final_ln_g [5L+1]=final_ln_b
VROWS = 5 * L + 2


# --------------------------------- kernel -------------------------------------
def _layernorm(x, g, b, eps=1e-5):
    mu = jnp.mean(x, axis=-1, keepdims=True)
    var = jnp.mean(jnp.square(x - mu), axis=-1, keepdims=True)
    return (x - mu) * jax.lax.rsqrt(var + eps) * g + b


def _make_forward(B, S, with_logits, with_loss):
    """Builds a pallas_call for one of the three forward variants."""
    assert with_logits or not with_loss

    def kernel(*refs):
        it = iter(refs)
        x_ref = next(it)                    # (1, S, D)  f32
        kmask_ref = next(it)                # (1, 1, S)  f32  (1 valid / 0 pad)
        if with_loss:
            labels_ref = next(it)           # (1, S, 1)  int32
            lmask_ref = next(it)            # (1, S, 1)  f32
        wqkv_ref = next(it)                 # (3L, NH, D, HD) bf16
        wo_ref = next(it)                   # (L, NH, HD, D)  bf16
        wm1_ref = next(it)                  # (L, D, MLP)     bf16
        wm2_ref = next(it)                  # (L, MLP, D)     bf16
        vecd_ref = next(it)                 # (VROWS, D)      f32
        bm1_ref = next(it)                  # (L, MLP)        f32
        wlm_ref = next(it) if with_logits else None   # (D, VOCAB) bf16
        hidden_ref = next(it)               # (1, S, D)
        logits_ref = next(it) if with_logits else None  # (1, S, VOCAB)
        loss_ref = next(it) if with_loss else None      # (1, 1, 2)

        x = x_ref[0]                                  # (S, D) f32
        kbias = (kmask_ref[0] - 1.0) * 1e9            # (1, S) additive key bias
        vecs = vecd_ref[...]                          # (VROWS, D)
        bm1s = bm1_ref[...]                           # (L, MLP)
        scale = 1.0 / (HD ** 0.5)

        for l in range(L):                            # static unrolled layers
            g1 = vecs[5 * l + 0:5 * l + 1]
            b1 = vecs[5 * l + 1:5 * l + 2]
            g2 = vecs[5 * l + 2:5 * l + 3]
            b2 = vecs[5 * l + 3:5 * l + 4]
            bo2 = vecs[5 * l + 4:5 * l + 5]
            bm1 = bm1s[l:l + 1]

            # ---- multi-head self-attention (all heads batched) ----
            h = _layernorm(x, g1, b1).astype(jnp.bfloat16)           # (S, D)
            hb = jnp.broadcast_to(h[None], (NH, S, D))               # (NH, S, D)
            q = jnp.einsum('hsd,hdf->hsf', hb, wqkv_ref[3 * l + 0],
                           preferred_element_type=jnp.float32)       # (NH, S, HD)
            k = jnp.einsum('hsd,hdf->hsf', hb, wqkv_ref[3 * l + 1],
                           preferred_element_type=jnp.float32)
            v = jnp.einsum('hsd,hdf->hsf', hb, wqkv_ref[3 * l + 2],
                           preferred_element_type=jnp.float32)
            s = jnp.einsum('hqf,hkf->hqk',
                           q.astype(jnp.bfloat16), k.astype(jnp.bfloat16),
                           preferred_element_type=jnp.float32) * scale
            s = s + kbias[None]                                      # (NH, S, S)
            s = s - jnp.max(s, axis=-1, keepdims=True)
            p = jnp.exp(s)
            p = p * pl.reciprocal(jnp.sum(p, axis=-1, keepdims=True), approx=True)
            o = jnp.einsum('hqk,hkf->hqf',
                           p.astype(jnp.bfloat16), v.astype(jnp.bfloat16),
                           preferred_element_type=jnp.float32)       # (NH, S, HD)
            op = jnp.einsum('hqf,hfd->hqd',
                            o.astype(jnp.bfloat16), wo_ref[l],
                            preferred_element_type=jnp.float32)      # (NH, S, D)
            x = x + jnp.sum(op, axis=0)

            # ---- MLP ----
            h2 = _layernorm(x, g2, b2).astype(jnp.bfloat16)
            m = jnp.dot(h2, wm1_ref[l],
                        preferred_element_type=jnp.float32) + bm1
            # TODO(synk): PyTorch nn.GELU default is the exact erf form; the
            # tanh approximation is used here for TPU-friendly lowering.
            m = jax.nn.gelu(m, approximate=True)
            m = jnp.dot(m.astype(jnp.bfloat16), wm2_ref[l],
                        preferred_element_type=jnp.float32) + bo2
            x = x + m

        gf = vecs[5 * L + 0:5 * L + 1]
        bf = vecs[5 * L + 1:5 * L + 2]
        hf = _layernorm(x, gf, bf)                                   # (S, D) f32
        hidden_ref[0] = hf   # v5e note: D=32 < 128 lanes -> masked store; left as-is at this size

        if with_logits:
            logits = jnp.dot(hf.astype(jnp.bfloat16), wlm_ref[...],
                             preferred_element_type=jnp.float32)     # (S, VOCAB)
            logits_ref[0] = logits

        if with_loss:
            # fused masked cross-entropy partials (no one-hot, no logits reload)
            lab = labels_ref[0]                                      # (S, 1) int32
            lmask = lmask_ref[0]                                     # (S, 1) f32
            mx = jnp.max(logits, axis=-1, keepdims=True)             # (S, 1)
            lse = jnp.log(jnp.sum(jnp.exp(logits - mx), axis=-1,
                                  keepdims=True)) + mx               # (S, 1)
            iota = jax.lax.broadcasted_iota(jnp.int32, (S, VOCAB), 1)
            tgt = jnp.sum(jnp.where(iota == lab, logits, 0.0),
                          axis=-1, keepdims=True)                    # (S, 1)
            nll = (lse - tgt) * lmask
            loss_ref[0] = jnp.concatenate(
                [jnp.sum(nll, keepdims=True), jnp.sum(lmask, keepdims=True)],
                axis=1)                                              # (1, 2)

    batch3 = lambda b: (b, 0, 0)
    zero2 = lambda b: (0, 0)
    zero3 = lambda b: (0, 0, 0)
    zero4 = lambda b: (0, 0, 0, 0)

    in_specs = [
        pl.BlockSpec((1, S, D), batch3),            # x_emb
        pl.BlockSpec((1, 1, S), batch3),            # key mask
    ]
    if with_loss:
        in_specs += [
            pl.BlockSpec((1, S, 1), batch3),        # labels
            pl.BlockSpec((1, S, 1), batch3),        # loss mask
        ]
    in_specs += [
        pl.BlockSpec((3 * L, NH, D, HD), zero4),    # wqkv
        pl.BlockSpec((L, NH, HD, D), zero4),        # wo
        pl.BlockSpec((L, D, MLP), zero3),           # wm1
        pl.BlockSpec((L, MLP, D), zero3),           # wm2
        pl.BlockSpec((VROWS, D), zero2),            # packed LN / bias vectors
        pl.BlockSpec((L, MLP), zero2),              # mlp-in bias
    ]
    if with_logits:
        in_specs.append(pl.BlockSpec((D, VOCAB), zero2))   # lm head

    out_specs = [pl.BlockSpec((1, S, D), batch3)]
    out_shape = [jax.ShapeDtypeStruct((B, S, D), jnp.float32)]
    if with_logits:
        out_specs.append(pl.BlockSpec((1, S, VOCAB), batch3))
        out_shape.append(jax.ShapeDtypeStruct((B, S, VOCAB), jnp.float32))
    if with_loss:
        out_specs.append(pl.BlockSpec((1, 1, 2), batch3))
        out_shape.append(jax.ShapeDtypeStruct((B, 1, 2), jnp.float32))

    return pl.pallas_call(
        kernel,
        grid_spec=pltpu.PrefetchScalarGridSpec(
            num_scalar_prefetch=0,
            grid=(B,),
            in_specs=in_specs,
            out_specs=out_specs,
        ),
        out_shape=out_shape,
        compiler_params=pltpu.CompilerParams(
            dimension_semantics=("parallel",),      # B axis -> both v7x TCs
            vmem_limit_bytes=32 * 1024 * 1024,
        ),
    )


# ------------------------------ module wrapper --------------------------------
class WrapperMBLMEncoderPallas:
    """JAX/Pallas equivalent of WrapperMBLMEncoder.forward / get_embeddings."""

    def __init__(self, params, is_embedder=False):
        self.params = params
        self.is_embedder = is_embedder

    def _run(self, input_ids, attention_mask, labels):
        B, S = input_ids.shape
        p = self.params
        # TODO(synk): embedding-table gather stays in XLA (dynamic row gather
        # has no clean rectangular BlockSpec expression at this size).
        x = p["emb"][input_ids] + p["pos"][None, :S]              # (B, S, D) f32
        if attention_mask is None:
            maskf = jnp.ones((B, S), jnp.float32)
        else:
            maskf = attention_mask.astype(jnp.float32)
        kmask = maskf.reshape(B, 1, S)

        with_logits = not self.is_embedder
        with_loss = labels is not None
        fwd = _make_forward(B, S, with_logits, with_loss)

        args = [x, kmask]
        if with_loss:
            args += [labels.astype(jnp.int32).reshape(B, S, 1),
                     maskf.reshape(B, S, 1)]
        args += [p["wqkv"], p["wo"], p["wm1"], p["wm2"], p["vec_d"], p["bm1"]]
        if with_logits:
            args.append(p["wlm"])
        return fwd(*args)

    def __call__(self, input_ids, attention_mask=None, labels=None):
        if self.is_embedder:
            assert attention_mask is None and labels is None
            (hidden,) = self._run(input_ids, None, None)
            return {"hidden_state": hidden}
        if labels is not None:
            hidden, logits, parts = self._run(input_ids, attention_mask, labels)
            # tiny finish: sum per-batch (nll, mask) partials -> scalar loss
            loss = jnp.sum(parts[:, 0, 0]) / jnp.maximum(jnp.sum(parts[:, 0, 1]), 1.0)
            return {"loss": loss, "logits": logits}
        hidden, logits = self._run(input_ids, attention_mask, None)
        return {"logits": logits}

    # TODO(synk): load_cfg / save_cfg are YAML file I/O with no Pallas
    # equivalent; parameters here are deterministic synthetic inits instead.


# ------------------------------- param init -----------------------------------
def init_params(key):
    ks = jax.random.split(key, 8)

    def nrm(k, shape, scl, dtype=jnp.float32):
        return (jax.random.normal(k, shape, jnp.float32) * scl).astype(dtype)

    vec_d = jnp.zeros((VROWS, D), jnp.float32)
    for l in range(L):
        vec_d = vec_d.at[5 * l + 0].set(1.0)    # ln1 gamma
        vec_d = vec_d.at[5 * l + 2].set(1.0)    # ln2 gamma
    vec_d = vec_d.at[5 * L + 0].set(1.0)        # final LN gamma

    return {
        "emb":   nrm(ks[0], (VOCAB, D), 0.02),
        "pos":   nrm(ks[1], (SEQ, D), 0.02),
        # q/k/v and heads separated at the block level: row 3l+i (i=q,k,v)
        "wqkv":  nrm(ks[2], (3 * L, NH, D, HD), D ** -0.5, jnp.bfloat16),
        "wo":    nrm(ks[3], (L, NH, HD, D), D ** -0.5, jnp.bfloat16),
        "wm1":   nrm(ks[4], (L, D, MLP), D ** -0.5, jnp.bfloat16),
        "wm2":   nrm(ks[5], (L, MLP, D), MLP ** -0.5, jnp.bfloat16),
        "wlm":   nrm(ks[6], (D, VOCAB), D ** -0.5, jnp.bfloat16),
        "vec_d": vec_d,                               # packed LN/bias vectors
        "bm1":   jnp.zeros((L, MLP), jnp.float32),    # mlp-in bias
    }


# ---------------------------------- main ---------------------------------------
if __name__ == "__main__":
    root = jax.random.PRNGKey(0)
    kp, kid, klab = jax.random.split(root, 3)

    params = init_params(kp)
    input_ids = jax.random.randint(kid, (BATCH, SEQ), 0, VOCAB, dtype=jnp.int32)
    attention_mask = jnp.ones((BATCH, SEQ), jnp.int32).at[1, -1].set(0)
    labels = jax.random.randint(klab, (BATCH, SEQ), 0, VOCAB, dtype=jnp.int32)

    model = WrapperMBLMEncoderPallas(params, is_embedder=False)
    embedder = WrapperMBLMEncoderPallas(params, is_embedder=True)

    run_logits = jax.jit(lambda ids, am: model(ids, am))
    run_loss = jax.jit(lambda ids, am, lab: model(ids, am, lab))
    run_emb = jax.jit(lambda ids: embedder(ids))

    out_logits = run_logits(input_ids, attention_mask)      # logits-only path
    out_loss = run_loss(input_ids, attention_mask, labels)  # loss + logits path
    out_emb = run_emb(input_ids)                            # embedder path

    jax.block_until_ready(
        (out_logits["logits"], out_loss["loss"], out_loss["logits"],
         out_emb["hidden_state"])
    )

    assert out_logits["logits"].shape == (BATCH, SEQ, VOCAB)
    assert out_loss["logits"].shape == (BATCH, SEQ, VOCAB)
    assert out_loss["loss"].shape == ()
    assert out_emb["hidden_state"].shape == (BATCH, SEQ, D)
    assert bool(jnp.isfinite(out_loss["loss"]))
    print("KERNEL_OK")
</pallas_src>

<mosaic_0001>
module attributes {stable_mosaic.version = 11 : i64} {
  func.func @kernel(%arg0: i32, %arg1: memref<1x8x32xf32, #tpu.memory_space<vmem>>, %arg2: memref<1x1x8xf32, #tpu.memory_space<vmem>>, %arg3: memref<6x4x32x8xbf16, #tpu.memory_space<vmem>>, %arg4: memref<2x4x8x32xbf16, #tpu.memory_space<vmem>>, %arg5: memref<2x32x64xbf16, #tpu.memory_space<vmem>>, %arg6: memref<2x64x32xbf16, #tpu.memory_space<vmem>>, %arg7: memref<12x32xf32, #tpu.memory_space<vmem>>, %arg8: memref<2x64xf32, #tpu.memory_space<vmem>>, %arg9: memref<32x256xbf16, #tpu.memory_space<vmem>>, %arg10: memref<1x8x32xf32, #tpu.memory_space<vmem>>, %arg11: memref<1x8x256xf32, #tpu.memory_space<vmem>>) attributes {dimension_semantics = [#tpu.dimension_semantics<parallel>], iteration_bounds = array<i64: 2>, scalar_prefetch = 0 : i64, scratch_operands = 0 : i64, tpu.core_type = #tpu.core_type<tc>, window_params = [{transform_indices = @transform_0, window_bounds = array<i64: 1, 8, 32>}, {transform_indices = @transform_1, window_bounds = array<i64: 1, 1, 8>}, {pipeline_mode = #tpu.pipeline_mode<synchronous>, transform_indices = @transform_2, window_bounds = array<i64: 6, 4, 32, 8>}, {pipeline_mode = #tpu.pipeline_mode<synchronous>, transform_indices = @transform_3, window_bounds = array<i64: 2, 4, 8, 32>}, {pipeline_mode = #tpu.pipeline_mode<synchronous>, transform_indices = @transform_4, window_bounds = array<i64: 2, 32, 64>}, {pipeline_mode = #tpu.pipeline_mode<synchronous>, transform_indices = @transform_5, window_bounds = array<i64: 2, 64, 32>}, {pipeline_mode = #tpu.pipeline_mode<synchronous>, transform_indices = @transform_6, window_bounds = array<i64: 12, 32>}, {pipeline_mode = #tpu.pipeline_mode<synchronous>, transform_indices = @transform_7, window_bounds = array<i64: 2, 64>}, {pipeline_mode = #tpu.pipeline_mode<synchronous>, transform_indices = @transform_8, window_bounds = array<i64: 32, 256>}, {transform_indices = @transform_9, window_bounds = array<i64: 1, 8, 32>}, {transform_indices = @transform_10, window_bounds = array<i64: 1, 8, 256>}]} {
    %c0 = arith.constant 0 : index
    %c0_0 = arith.constant 0 : index
    %c0_1 = arith.constant 0 : index
    %0 = vector.load %arg1[%c0, %c0_0, %c0_1] : memref<1x8x32xf32, #tpu.memory_space<vmem>>, vector<1x8x32xf32>
    %1 = vector.shape_cast %0 : vector<1x8x32xf32> to vector<8x32xf32>
    %c0_2 = arith.constant 0 : index
    %c0_3 = arith.constant 0 : index
    %c0_4 = arith.constant 0 : index
    %2 = vector.load %arg2[%c0_2, %c0_3, %c0_4] : memref<1x1x8xf32, #tpu.memory_space<vmem>>, vector<1x1x8xf32>
    %3 = vector.shape_cast %2 : vector<1x1x8xf32> to vector<1x8xf32>
    %cst = arith.constant 1.000000e+00 : f32
    %4 = vector.broadcast %cst : f32 to vector<1x8xf32>
    %5 = arith.subf %3, %4 : vector<1x8xf32>
    %cst_5 = arith.constant 1.000000e+09 : f32
    %6 = vector.broadcast %cst_5 : f32 to vector<1x8xf32>
    %7 = arith.mulf %5, %6 : vector<1x8xf32>
    %c0_6 = arith.constant 0 : index
    %c0_7 = arith.constant 0 : index
    %8 = vector.load %arg7[%c0_6, %c0_7] : memref<12x32xf32, #tpu.memory_space<vmem>>, vector<12x32xf32>
    %c0_8 = arith.constant 0 : index
    %c0_9 = arith.constant 0 : index
    %9 = vector.load %arg8[%c0_8, %c0_9] : memref<2x64xf32, #tpu.memory_space<vmem>>, vector<2x64xf32>
    %10 = vector.extract_strided_slice %8 {offsets = [0, 0], sizes = [1, 32], strides = [1, 1]} : vector<12x32xf32> to vector<1x32xf32>
    %11 = vector.extract_strided_slice %8 {offsets = [1, 0], sizes = [1, 32], strides = [1, 1]} : vector<12x32xf32> to vector<1x32xf32>
    %12 = vector.extract_strided_slice %8 {offsets = [2, 0], sizes = [1, 32], strides = [1, 1]} : vector<12x32xf32> to vector<1x32xf32>
    %13 = vector.extract_strided_slice %8 {offsets = [3, 0], sizes = [1, 32], strides = [1, 1]} : vector<12x32xf32> to vector<1x32xf32>
    %14 = vector.extract_strided_slice %8 {offsets = [4, 0], sizes = [1, 32], strides = [1, 1]} : vector<12x32xf32> to vector<1x32xf32>
    %15 = vector.extract_strided_slice %9 {offsets = [0, 0], sizes = [1, 64], strides = [1, 1]} : vector<2x64xf32> to vector<1x64xf32>
    %cst_10 = arith.constant dense<0.000000e+00> : vector<8xf32>
    %16 = vector.multi_reduction <add>, %1, %cst_10 [1] : vector<8x32xf32> to vector<8xf32>
    %17 = vector.shape_cast %16 : vector<8xf32> to vector<8x1xf32>
    %cst_11 = arith.constant 3.200000e+01 : f32
    %18 = vector.broadcast %cst_11 : f32 to vector<8x1xf32>
    %19 = arith.divf %17, %18 : vector<8x1xf32>
    %20 = vector.broadcast %19 : vector<8x1xf32> to vector<8x32xf32>
    %21 = arith.subf %1, %20 : vector<8x32xf32>
    %22 = arith.mulf %21, %21 : vector<8x32xf32>
    %cst_12 = arith.constant dense<0.000000e+00> : vector<8xf32>
    %23 = vector.multi_reduction <add>, %22, %cst_12 [1] : vector<8x32xf32> to vector<8xf32>
    %24 = vector.shape_cast %23 : vector<8xf32> to vector<8x1xf32>
    %cst_13 = arith.constant 3.200000e+01 : f32
    %25 = vector.broadcast %cst_13 : f32 to vector<8x1xf32>
    %26 = arith.divf %24, %25 : vector<8x1xf32>
    %27 = vector.broadcast %19 : vector<8x1xf32> to vector<8x32xf32>
    %28 = arith.subf %1, %27 : vector<8x32xf32>
    %cst_14 = arith.constant 9.99999974E-6 : f32
    %29 = vector.broadcast %cst_14 : f32 to vector<8x1xf32>
    %30 = arith.addf %26, %29 : vector<8x1xf32>
    %31 = math.rsqrt %30 : vector<8x1xf32>
    %32 = vector.broadcast %31 : vector<8x1xf32> to vector<8x32xf32>
    %33 = arith.mulf %28, %32 : vector<8x32xf32>
    %34 = vector.broadcast %10 : vector<1x32xf32> to vector<8x32xf32>
    %35 = arith.mulf %33, %34 : vector<8x32xf32>
    %36 = vector.broadcast %11 : vector<1x32xf32> to vector<8x32xf32>
    %37 = arith.addf %35, %36 : vector<8x32xf32>
    %38 = arith.truncf %37 : vector<8x32xf32> to vector<8x32xbf16>
    %39 = vector.shape_cast %38 : vector<8x32xbf16> to vector<1x8x32xbf16>
    %40 = vector.shape_cast %39 : vector<1x8x32xbf16> to vector<1x8x32xbf16>
    %41 = vector.broadcast %40 : vector<1x8x32xbf16> to vector<4x8x32xbf16>
    %c0_15 = arith.constant 0 : index
    %c0_16 = arith.constant 0 : index
    %c0_17 = arith.constant 0 : index
    %c0_18 = arith.constant 0 : index
    %42 = vector.load %arg3[%c0_15, %c0_16, %c0_17, %c0_18] : memref<6x4x32x8xbf16, #tpu.memory_space<vmem>>, vector<1x4x32x8xbf16>
    %43 = vector.shape_cast %42 : vector<1x4x32x8xbf16> to vector<4x32x8xbf16>
    "tpu.trace_start"() <{level = 10 : i32, message = "hsd,hdf->hsf"}> : () -> ()
    %cst_19 = arith.constant dense<0.000000e+00> : vector<4x8x8xf32>
    %44 = tpu.matmul %41, %43, %cst_19 {dimension_numbers = #tpu.dot_dimension_numbers<[2], [1], [1], [2], [0, 0, 0, 1, 1, 2], [0], [0]>} : vector<4x8x32xbf16>, vector<4x32x8xbf16>, vector<4x8x8xf32> -> vector<4x8x8xf32>
    "tpu.trace_stop"() : () -> ()
    %c1 = arith.constant 1 : index
    %c0_20 = arith.constant 0 : index
    %c0_21 = arith.constant 0 : index
    %c0_22 = arith.constant 0 : index
    %45 = vector.load %arg3[%c1, %c0_20, %c0_21, %c0_22] : memref<6x4x32x8xbf16, #tpu.memory_space<vmem>>, vector<1x4x32x8xbf16>
    %46 = vector.shape_cast %45 : vector<1x4x32x8xbf16> to vector<4x32x8xbf16>
    "tpu.trace_start"() <{level = 10 : i32, message = "hsd,hdf->hsf"}> : () -> ()
    %cst_23 = arith.constant dense<0.000000e+00> : vector<4x8x8xf32>
    %47 = tpu.matmul %41, %46, %cst_23 {dimension_numbers = #tpu.dot_dimension_numbers<[2], [1], [1], [2], [0, 0, 0, 1, 1, 2], [0], [0]>} : vector<4x8x32xbf16>, vector<4x32x8xbf16>, vector<4x8x8xf32> -> vector<4x8x8xf32>
    "tpu.trace_stop"() : () -> ()
    %c2 = arith.constant 2 : index
    %c0_24 = arith.constant 0 : index
    %c0_25 = arith.constant 0 : index
    %c0_26 = arith.constant 0 : index
    %48 = vector.load %arg3[%c2, %c0_24, %c0_25, %c0_26] : memref<6x4x32x8xbf16, #tpu.memory_space<vmem>>, vector<1x4x32x8xbf16>
    %49 = vector.shape_cast %48 : vector<1x4x32x8xbf16> to vector<4x32x8xbf16>
    "tpu.trace_start"() <{level = 10 : i32, message = "hsd,hdf->hsf"}> : () -> ()
    %cst_27 = arith.constant dense<0.000000e+00> : vector<4x8x8xf32>
    %50 = tpu.matmul %41, %49, %cst_27 {dimension_numbers = #tpu.dot_dimension_numbers<[2], [1], [1], [2], [0, 0, 0, 1, 1, 2], [0], [0]>} : vector<4x8x32xbf16>, vector<4x32x8xbf16>, vector<4x8x8xf32> -> vector<4x8x8xf32>
    "tpu.trace_stop"() : () -> ()
    %51 = arith.truncf %44 : vector<4x8x8xf32> to vector<4x8x8xbf16>
    %52 = arith.truncf %47 : vector<4x8x8xf32> to vector<4x8x8xbf16>
    "tpu.trace_start"() <{level = 10 : i32, message = "hqf,hkf->hqk"}> : () -> ()
    %cst_28 = arith.constant dense<0.000000e+00> : vector<4x8x8xf32>
    %53 = tpu.matmul %51, %52, %cst_28 {dimension_numbers = #tpu.dot_dimension_numbers<[2], [2], [1], [1], [0, 0, 0, 1, 1, 1], [0], [0]>} : vector<4x8x8xbf16>, vector<4x8x8xbf16>, vector<4x8x8xf32> -> vector<4x8x8xf32>
    "tpu.trace_stop"() : () -> ()
    %cst_29 = arith.constant 0.353553385 : f32
    %54 = vector.broadcast %cst_29 : f32 to vector<4x8x8xf32>
    %55 = arith.mulf %53, %54 : vector<4x8x8xf32>
    %56 = vector.shape_cast %7 : vector<1x8xf32> to vector<1x1x8xf32>
    %57 = vector.broadcast %56 : vector<1x1x8xf32> to vector<4x8x8xf32>
    %58 = arith.addf %55, %57 : vector<4x8x8xf32>
    %cst_30 = arith.constant dense<0xFF800000> : vector<4x8xf32>
    %59 = vector.multi_reduction <maximumf>, %58, %cst_30 [2] : vector<4x8x8xf32> to vector<4x8xf32>
    %60 = vector.shape_cast %59 : vector<4x8xf32> to vector<4x8x1xf32>
    %61 = vector.broadcast %60 : vector<4x8x1xf32> to vector<4x8x8xf32>
    %62 = arith.subf %58, %61 : vector<4x8x8xf32>
    %63 = math.exp %62 : vector<4x8x8xf32>
    %cst_31 = arith.constant dense<0.000000e+00> : vector<4x8xf32>
    %64 = vector.multi_reduction <add>, %63, %cst_31 [2] : vector<4x8x8xf32> to vector<4x8xf32>
    %65 = vector.shape_cast %64 : vector<4x8xf32> to vector<4x8x1xf32>
    %66 = tpu.reciprocal %65 {approx = true} : vector<4x8x1xf32> -> vector<4x8x1xf32>
    %67 = vector.broadcast %66 : vector<4x8x1xf32> to vector<4x8x8xf32>
    %68 = arith.mulf %63, %67 : vector<4x8x8xf32>
    %69 = arith.truncf %68 : vector<4x8x8xf32> to vector<4x8x8xbf16>
    %70 = arith.truncf %50 : vector<4x8x8xf32> to vector<4x8x8xbf16>
    "tpu.trace_start"() <{level = 10 : i32, message = "hqk,hkf->hqf"}> : () -> ()
    %cst_32 = arith.constant dense<0.000000e+00> : vector<4x8x8xf32>
    %71 = tpu.matmul %69, %70, %cst_32 {dimension_numbers = #tpu.dot_dimension_numbers<[2], [1], [1], [2], [0, 0, 0, 1, 1, 2], [0], [0]>} : vector<4x8x8xbf16>, vector<4x8x8xbf16>, vector<4x8x8xf32> -> vector<4x8x8xf32>
    "tpu.trace_stop"() : () -> ()
    %72 = arith.truncf %71 : vector<4x8x8xf32> to vector<4x8x8xbf16>
    %c0_33 = arith.constant 0 : index
    %c0_34 = arith.constant 0 : index
    %c0_35 = arith.constant 0 : index
    %c0_36 = arith.constant 0 : index
    %73 = vector.load %arg4[%c0_33, %c0_34, %c0_35, %c0_36] : memref<2x4x8x32xbf16, #tpu.memory_space<vmem>>, vector<1x4x8x32xbf16>
    %74 = vector.shape_cast %73 : vector<1x4x8x32xbf16> to vector<4x8x32xbf16>
    "tpu.trace_start"() <{level = 10 : i32, message = "hqf,hfd->hqd"}> : () -> ()
    %cst_37 = arith.constant dense<0.000000e+00> : vector<4x8x32xf32>
    %75 = tpu.matmul %72, %74, %cst_37 {dimension_numbers = #tpu.dot_dimension_numbers<[2], [1], [1], [2], [0, 0, 0, 1, 1, 2], [0], [0]>} : vector<4x8x8xbf16>, vector<4x8x32xbf16>, vector<4x8x32xf32> -> vector<4x8x32xf32>
    "tpu.trace_stop"() : () -> ()
    %cst_38 = arith.constant dense<0.000000e+00> : vector<8x32xf32>
    %76 = vector.multi_reduction <add>, %75, %cst_38 [0] : vector<4x8x32xf32> to vector<8x32xf32>
    %77 = arith.addf %1, %76 : vector<8x32xf32>
    %cst_39 = arith.constant dense<0.000000e+00> : vector<8xf32>
    %78 = vector.multi_reduction <add>, %77, %cst_39 [1] : vector<8x32xf32> to vector<8xf32>
    %79 = vector.shape_cast %78 : vector<8xf32> to vector<8x1xf32>
    %cst_40 = arith.constant 3.200000e+01 : f32
    %80 = vector.broadcast %cst_40 : f32 to vector<8x1xf32>
    %81 = arith.divf %79, %80 : vector<8x1xf32>
    %82 = vector.broadcast %81 : vector<8x1xf32> to vector<8x32xf32>
    %83 = arith.subf %77, %82 : vector<8x32xf32>
    %84 = arith.mulf %83, %83 : vector<8x32xf32>
    %cst_41 = arith.constant dense<0.000000e+00> : vector<8xf32>
    %85 = vector.multi_reduction <add>, %84, %cst_41 [1] : vector<8x32xf32> to vector<8xf32>
    %86 = vector.shape_cast %85 : vector<8xf32> to vector<8x1xf32>
    %cst_42 = arith.constant 3.200000e+01 : f32
    %87 = vector.broadcast %cst_42 : f32 to vector<8x1xf32>
    %88 = arith.divf %86, %87 : vector<8x1xf32>
    %89 = vector.broadcast %81 : vector<8x1xf32> to vector<8x32xf32>
    %90 = arith.subf %77, %89 : vector<8x32xf32>
    %cst_43 = arith.constant 9.99999974E-6 : f32
    %91 = vector.broadcast %cst_43 : f32 to vector<8x1xf32>
    %92 = arith.addf %88, %91 : vector<8x1xf32>
    %93 = math.rsqrt %92 : vector<8x1xf32>
    %94 = vector.broadcast %93 : vector<8x1xf32> to vector<8x32xf32>
    %95 = arith.mulf %90, %94 : vector<8x32xf32>
    %96 = vector.broadcast %12 : vector<1x32xf32> to vector<8x32xf32>
    %97 = arith.mulf %95, %96 : vector<8x32xf32>
    %98 = vector.broadcast %13 : vector<1x32xf32> to vector<8x32xf32>
    %99 = arith.addf %97, %98 : vector<8x32xf32>
    %100 = arith.truncf %99 : vector<8x32xf32> to vector<8x32xbf16>
    %c0_44 = arith.constant 0 : index
    %c0_45 = arith.constant 0 : index
    %c0_46 = arith.constant 0 : index
    %101 = vector.load %arg5[%c0_44, %c0_45, %c0_46] : memref<2x32x64xbf16, #tpu.memory_space<vmem>>, vector<1x32x64xbf16>
    %102 = vector.shape_cast %101 : vector<1x32x64xbf16> to vector<32x64xbf16>
    %cst_47 = arith.constant dense<0.000000e+00> : vector<8x64xf32>
    %103 = tpu.matmul %100, %102, %cst_47 {dimension_numbers = #tpu.dot_dimension_numbers<[1], [0], [0], [1], [0, 0, 1, 1], [], []>} : vector<8x32xbf16>, vector<32x64xbf16>, vector<8x64xf32> -> vector<8x64xf32>
    %104 = vector.broadcast %15 : vector<1x64xf32> to vector<8x64xf32>
    %105 = arith.addf %103, %104 : vector<8x64xf32>
    %106 = arith.mulf %105, %105 : vector<8x64xf32>
    %107 = arith.mulf %105, %106 : vector<8x64xf32>
    %cst_48 = arith.constant 4.471500e-02 : f32
    %108 = vector.broadcast %cst_48 : f32 to vector<8x64xf32>
    %109 = arith.mulf %108, %107 : vector<8x64xf32>
    %110 = arith.addf %105, %109 : vector<8x64xf32>
    %cst_49 = arith.constant 0.797884583 : f32
    %111 = vector.broadcast %cst_49 : f32 to vector<8x64xf32>
    %112 = arith.mulf %111, %110 : vector<8x64xf32>
    %113 = math.tanh %112 : vector<8x64xf32>
    %cst_50 = arith.constant 1.000000e+00 : f32
    %114 = vector.broadcast %cst_50 : f32 to vector<8x64xf32>
    %115 = arith.addf %114, %113 : vector<8x64xf32>
    %cst_51 = arith.constant 5.000000e-01 : f32
    %116 = vector.broadcast %cst_51 : f32 to vector<8x64xf32>
    %117 = arith.mulf %116, %115 : vector<8x64xf32>
    %118 = arith.mulf %105, %117 : vector<8x64xf32>
    %119 = arith.truncf %118 : vector<8x64xf32> to vector<8x64xbf16>
    %c0_52 = arith.constant 0 : index
    %c0_53 = arith.constant 0 : index
    %c0_54 = arith.constant 0 : index
    %120 = vector.load %arg6[%c0_52, %c0_53, %c0_54] : memref<2x64x32xbf16, #tpu.memory_space<vmem>>, vector<1x64x32xbf16>
    %121 = vector.shape_cast %120 : vector<1x64x32xbf16> to vector<64x32xbf16>
    %cst_55 = arith.constant dense<0.000000e+00> : vector<8x32xf32>
    %122 = tpu.matmul %119, %121, %cst_55 {dimension_numbers = #tpu.dot_dimension_numbers<[1], [0], [0], [1], [0, 0, 1, 1], [], []>} : vector<8x64xbf16>, vector<64x32xbf16>, vector<8x32xf32> -> vector<8x32xf32>
    %123 = vector.broadcast %14 : vector<1x32xf32> to vector<8x32xf32>
    %124 = arith.addf %122, %123 : vector<8x32xf32>
    %125 = arith.addf %77, %124 : vector<8x32xf32>
    %126 = vector.extract_strided_slice %8 {offsets = [5, 0], sizes = [1, 32], strides = [1, 1]} : vector<12x32xf32> to vector<1x32xf32>
    %127 = vector.extract_strided_slice %8 {offsets = [6, 0], sizes = [1, 32], strides = [1, 1]} : vector<12x32xf32> to vector<1x32xf32>
    %128 = vector.extract_strided_slice %8 {offsets = [7, 0], sizes = [1, 32], strides = [1, 1]} : vector<12x32xf32> to vector<1x32xf32>
    %129 = vector.extract_strided_slice %8 {offsets = [8, 0], sizes = [1, 32], strides = [1, 1]} : vector<12x32xf32> to vector<1x32xf32>
    %130 = vector.extract_strided_slice %8 {offsets = [9, 0], sizes = [1, 32], strides = [1, 1]} : vector<12x32xf32> to vector<1x32xf32>
    %131 = vector.extract_strided_slice %9 {offsets = [1, 0], sizes = [1, 64], strides = [1, 1]} : vector<2x64xf32> to vector<1x64xf32>
    %cst_56 = arith.constant dense<0.000000e+00> : vector<8xf32>
    %132 = vector.multi_reduction <add>, %125, %cst_56 [1] : vector<8x32xf32> to vector<8xf32>
    %133 = vector.shape_cast %132 : vector<8xf32> to vector<8x1xf32>
    %cst_57 = arith.constant 3.200000e+01 : f32
    %134 = vector.broadcast %cst_57 : f32 to vector<8x1xf32>
    %135 = arith.divf %133, %134 : vector<8x1xf32>
    %136 = vector.broadcast %135 : vector<8x1xf32> to vector<8x32xf32>
    %137 = arith.subf %125, %136 : vector<8x32xf32>
    %138 = arith.mulf %137, %137 : vector<8x32xf32>
    %cst_58 = arith.constant dense<0.000000e+00> : vector<8xf32>
    %139 = vector.multi_reduction <add>, %138, %cst_58 [1] : vector<8x32xf32> to vector<8xf32>
    %140 = vector.shape_cast %139 : vector<8xf32> to vector<8x1xf32>
    %cst_59 = arith.constant 3.200000e+01 : f32
    %141 = vector.broadcast %cst_59 : f32 to vector<8x1xf32>
    %142 = arith.divf %140, %141 : vector<8x1xf32>
    %143 = vector.broadcast %135 : vector<8x1xf32> to vector<8x32xf32>
    %144 = arith.subf %125, %143 : vector<8x32xf32>
    %cst_60 = arith.constant 9.99999974E-6 : f32
    %145 = vector.broadcast %cst_60 : f32 to vector<8x1xf32>
    %146 = arith.addf %142, %145 : vector<8x1xf32>
    %147 = math.rsqrt %146 : vector<8x1xf32>
    %148 = vector.broadcast %147 : vector<8x1xf32> to vector<8x32xf32>
    %149 = arith.mulf %144, %148 : vector<8x32xf32>
    %150 = vector.broadcast %126 : vector<1x32xf32> to vector<8x32xf32>
    %151 = arith.mulf %149, %150 : vector<8x32xf32>
    %152 = vector.broadcast %127 : vector<1x32xf32> to vector<8x32xf32>
    %153 = arith.addf %151, %152 : vector<8x32xf32>
    %154 = arith.truncf %153 : vector<8x32xf32> to vector<8x32xbf16>
    %155 = vector.shape_cast %154 : vector<8x32xbf16> to vector<1x8x32xbf16>
    %156 = vector.shape_cast %155 : vector<1x8x32xbf16> to vector<1x8x32xbf16>
    %157 = vector.broadcast %156 : vector<1x8x32xbf16> to vector<4x8x32xbf16>
    %c3 = arith.constant 3 : index
    %c0_61 = arith.constant 0 : index
    %c0_62 = arith.constant 0 : index
    %c0_63 = arith.constant 0 : index
    %158 = vector.load %arg3[%c3, %c0_61, %c0_62, %c0_63] : memref<6x4x32x8xbf16, #tpu.memory_space<vmem>>, vector<1x4x32x8xbf16>
    %159 = vector.shape_cast %158 : vector<1x4x32x8xbf16> to vector<4x32x8xbf16>
    "tpu.trace_start"() <{level = 10 : i32, message = "hsd,hdf->hsf"}> : () -> ()
    %cst_64 = arith.constant dense<0.000000e+00> : vector<4x8x8xf32>
    %160 = tpu.matmul %157, %159, %cst_64 {dimension_numbers = #tpu.dot_dimension_numbers<[2], [1], [1], [2], [0, 0, 0, 1, 1, 2], [0], [0]>} : vector<4x8x32xbf16>, vector<4x32x8xbf16>, vector<4x8x8xf32> -> vector<4x8x8xf32>
    "tpu.trace_stop"() : () -> ()
    %c4 = arith.constant 4 : index
    %c0_65 = arith.constant 0 : index
    %c0_66 = arith.constant 0 : index
    %c0_67 = arith.constant 0 : index
    %161 = vector.load %arg3[%c4, %c0_65, %c0_66, %c0_67] : memref<6x4x32x8xbf16, #tpu.memory_space<vmem>>, vector<1x4x32x8xbf16>
    %162 = vector.shape_cast %161 : vector<1x4x32x8xbf16> to vector<4x32x8xbf16>
    "tpu.trace_start"() <{level = 10 : i32, message = "hsd,hdf->hsf"}> : () -> ()
    %cst_68 = arith.constant dense<0.000000e+00> : vector<4x8x8xf32>
    %163 = tpu.matmul %157, %162, %cst_68 {dimension_numbers = #tpu.dot_dimension_numbers<[2], [1], [1], [2], [0, 0, 0, 1, 1, 2], [0], [0]>} : vector<4x8x32xbf16>, vector<4x32x8xbf16>, vector<4x8x8xf32> -> vector<4x8x8xf32>
    "tpu.trace_stop"() : () -> ()
    %c5 = arith.constant 5 : index
    %c0_69 = arith.constant 0 : index
    %c0_70 = arith.constant 0 : index
    %c0_71 = arith.constant 0 : index
    %164 = vector.load %arg3[%c5, %c0_69, %c0_70, %c0_71] : memref<6x4x32x8xbf16, #tpu.memory_space<vmem>>, vector<1x4x32x8xbf16>
    %165 = vector.shape_cast %164 : vector<1x4x32x8xbf16> to vector<4x32x8xbf16>
    "tpu.trace_start"() <{level = 10 : i32, message = "hsd,hdf->hsf"}> : () -> ()
    %cst_72 = arith.constant dense<0.000000e+00> : vector<4x8x8xf32>
    %166 = tpu.matmul %157, %165, %cst_72 {dimension_numbers = #tpu.dot_dimension_numbers<[2], [1], [1], [2], [0, 0, 0, 1, 1, 2], [0], [0]>} : vector<4x8x32xbf16>, vector<4x32x8xbf16>, vector<4x8x8xf32> -> vector<4x8x8xf32>
    "tpu.trace_stop"() : () -> ()
    %167 = arith.truncf %160 : vector<4x8x8xf32> to vector<4x8x8xbf16>
    %168 = arith.truncf %163 : vector<4x8x8xf32> to vector<4x8x8xbf16>
    "tpu.trace_start"() <{level = 10 : i32, message = "hqf,hkf->hqk"}> : () -> ()
    %cst_73 = arith.constant dense<0.000000e+00> : vector<4x8x8xf32>
    %169 = tpu.matmul %167, %168, %cst_73 {dimension_numbers = #tpu.dot_dimension_numbers<[2], [2], [1], [1], [0, 0, 0, 1, 1, 1], [0], [0]>} : vector<4x8x8xbf16>, vector<4x8x8xbf16>, vector<4x8x8xf32> -> vector<4x8x8xf32>
    "tpu.trace_stop"() : () -> ()
    %cst_74 = arith.constant 0.353553385 : f32
    %170 = vector.broadcast %cst_74 : f32 to vector<4x8x8xf32>
    %171 = arith.mulf %169, %170 : vector<4x8x8xf32>
    %172 = vector.shape_cast %7 : vector<1x8xf32> to vector<1x1x8xf32>
    %173 = vector.broadcast %172 : vector<1x1x8xf32> to vector<4x8x8xf32>
    %174 = arith.addf %171, %173 : vector<4x8x8xf32>
    %cst_75 = arith.constant dense<0xFF800000> : vector<4x8xf32>
    %175 = vector.multi_reduction <maximumf>, %174, %cst_75 [2] : vector<4x8x8xf32> to vector<4x8xf32>
    %176 = vector.shape_cast %175 : vector<4x8xf32> to vector<4x8x1xf32>
    %177 = vector.broadcast %176 : vector<4x8x1xf32> to vector<4x8x8xf32>
    %178 = arith.subf %174, %177 : vector<4x8x8xf32>
    %179 = math.exp %178 : vector<4x8x8xf32>
    %cst_76 = arith.constant dense<0.000000e+00> : vector<4x8xf32>
    %180 = vector.multi_reduction <add>, %179, %cst_76 [2] : vector<4x8x8xf32> to vector<4x8xf32>
    %181 = vector.shape_cast %180 : vector<4x8xf32> to vector<4x8x1xf32>
    %182 = tpu.reciprocal %181 {approx = true} : vector<4x8x1xf32> -> vector<4x8x1xf32>
    %183 = vector.broadcast %182 : vector<4x8x1xf32> to vector<4x8x8xf32>
    %184 = arith.mulf %179, %183 : vector<4x8x8xf32>
    %185 = arith.truncf %184 : vector<4x8x8xf32> to vector<4x8x8xbf16>
    %186 = arith.truncf %166 : vector<4x8x8xf32> to vector<4x8x8xbf16>
    "tpu.trace_start"() <{level = 10 : i32, message = "hqk,hkf->hqf"}> : () -> ()
    %cst_77 = arith.constant dense<0.000000e+00> : vector<4x8x8xf32>
    %187 = tpu.matmul %185, %186, %cst_77 {dimension_numbers = #tpu.dot_dimension_numbers<[2], [1], [1], [2], [0, 0, 0, 1, 1, 2], [0], [0]>} : vector<4x8x8xbf16>, vector<4x8x8xbf16>, vector<4x8x8xf32> -> vector<4x8x8xf32>
    "tpu.trace_stop"() : () -> ()
    %188 = arith.truncf %187 : vector<4x8x8xf32> to vector<4x8x8xbf16>
    %c1_78 = arith.constant 1 : index
    %c0_79 = arith.constant 0 : index
    %c0_80 = arith.constant 0 : index
    %c0_81 = arith.constant 0 : index
    %189 = vector.load %arg4[%c1_78, %c0_79, %c0_80, %c0_81] : memref<2x4x8x32xbf16, #tpu.memory_space<vmem>>, vector<1x4x8x32xbf16>
    %190 = vector.shape_cast %189 : vector<1x4x8x32xbf16> to vector<4x8x32xbf16>
    "tpu.trace_start"() <{level = 10 : i32, message = "hqf,hfd->hqd"}> : () -> ()
    %cst_82 = arith.constant dense<0.000000e+00> : vector<4x8x32xf32>
    %191 = tpu.matmul %188, %190, %cst_82 {dimension_numbers = #tpu.dot_dimension_numbers<[2], [1], [1], [2], [0, 0, 0, 1, 1, 2], [0], [0]>} : vector<4x8x8xbf16>, vector<4x8x32xbf16>, vector<4x8x32xf32> -> vector<4x8x32xf32>
    "tpu.trace_stop"() : () -> ()
    %cst_83 = arith.constant dense<0.000000e+00> : vector<8x32xf32>
    %192 = vector.multi_reduction <add>, %191, %cst_83 [0] : vector<4x8x32xf32> to vector<8x32xf32>
    %193 = arith.addf %125, %192 : vector<8x32xf32>
    %cst_84 = arith.constant dense<0.000000e+00> : vector<8xf32>
    %194 = vector.multi_reduction <add>, %193, %cst_84 [1] : vector<8x32xf32> to vector<8xf32>
    %195 = vector.shape_cast %194 : vector<8xf32> to vector<8x1xf32>
    %cst_85 = arith.constant 3.200000e+01 : f32
    %196 = vector.broadcast %cst_85 : f32 to vector<8x1xf32>
    %197 = arith.divf %195, %196 : vector<8x1xf32>
    %198 = vector.broadcast %197 : vector<8x1xf32> to vector<8x32xf32>
    %199 = arith.subf %193, %198 : vector<8x32xf32>
    %200 = arith.mulf %199, %199 : vector<8x32xf32>
    %cst_86 = arith.constant dense<0.000000e+00> : vector<8xf32>
    %201 = vector.multi_reduction <add>, %200, %cst_86 [1] : vector<8x32xf32> to vector<8xf32>
    %202 = vector.shape_cast %201 : vector<8xf32> to vector<8x1xf32>
    %cst_87 = arith.constant 3.200000e+01 : f32
    %203 = vector.broadcast %cst_87 : f32 to vector<8x1xf32>
    %204 = arith.divf %202, %203 : vector<8x1xf32>
    %205 = vector.broadcast %197 : vector<8x1xf32> to vector<8x32xf32>
    %206 = arith.subf %193, %205 : vector<8x32xf32>
    %cst_88 = arith.constant 9.99999974E-6 : f32
    %207 = vector.broadcast %cst_88 : f32 to vector<8x1xf32>
    %208 = arith.addf %204, %207 : vector<8x1xf32>
    %209 = math.rsqrt %208 : vector<8x1xf32>
    %210 = vector.broadcast %209 : vector<8x1xf32> to vector<8x32xf32>
    %211 = arith.mulf %206, %210 : vector<8x32xf32>
    %212 = vector.broadcast %128 : vector<1x32xf32> to vector<8x32xf32>
    %213 = arith.mulf %211, %212 : vector<8x32xf32>
    %214 = vector.broadcast %129 : vector<1x32xf32> to vector<8x32xf32>
    %215 = arith.addf %213, %214 : vector<8x32xf32>
    %216 = arith.truncf %215 : vector<8x32xf32> to vector<8x32xbf16>
    %c1_89 = arith.constant 1 : index
    %c0_90 = arith.constant 0 : index
    %c0_91 = arith.constant 0 : index
    %217 = vector.load %arg5[%c1_89, %c0_90, %c0_91] : memref<2x32x64xbf16, #tpu.memory_space<vmem>>, vector<1x32x64xbf16>
    %218 = vector.shape_cast %217 : vector<1x32x64xbf16> to vector<32x64xbf16>
    %cst_92 = arith.constant dense<0.000000e+00> : vector<8x64xf32>
    %219 = tpu.matmul %216, %218, %cst_92 {dimension_numbers = #tpu.dot_dimension_numbers<[1], [0], [0], [1], [0, 0, 1, 1], [], []>} : vector<8x32xbf16>, vector<32x64xbf16>, vector<8x64xf32> -> vector<8x64xf32>
    %220 = vector.broadcast %131 : vector<1x64xf32> to vector<8x64xf32>
    %221 = arith.addf %219, %220 : vector<8x64xf32>
    %222 = arith.mulf %221, %221 : vector<8x64xf32>
    %223 = arith.mulf %221, %222 : vector<8x64xf32>
    %cst_93 = arith.constant 4.471500e-02 : f32
    %224 = vector.broadcast %cst_93 : f32 to vector<8x64xf32>
    %225 = arith.mulf %224, %223 : vector<8x64xf32>
    %226 = arith.addf %221, %225 : vector<8x64xf32>
    %cst_94 = arith.constant 0.797884583 : f32
    %227 = vector.broadcast %cst_94 : f32 to vector<8x64xf32>
    %228 = arith.mulf %227, %226 : vector<8x64xf32>
    %229 = math.tanh %228 : vector<8x64xf32>
    %cst_95 = arith.constant 1.000000e+00 : f32
    %230 = vector.broadcast %cst_95 : f32 to vector<8x64xf32>
    %231 = arith.addf %230, %229 : vector<8x64xf32>
    %cst_96 = arith.constant 5.000000e-01 : f32
    %232 = vector.broadcast %cst_96 : f32 to vector<8x64xf32>
    %233 = arith.mulf %232, %231 : vector<8x64xf32>
    %234 = arith.mulf %221, %233 : vector<8x64xf32>
    %235 = arith.truncf %234 : vector<8x64xf32> to vector<8x64xbf16>
    %c1_97 = arith.constant 1 : index
    %c0_98 = arith.constant 0 : index
    %c0_99 = arith.constant 0 : index
    %236 = vector.load %arg6[%c1_97, %c0_98, %c0_99] : memref<2x64x32xbf16, #tpu.memory_space<vmem>>, vector<1x64x32xbf16>
    %237 = vector.shape_cast %236 : vector<1x64x32xbf16> to vector<64x32xbf16>
    %cst_100 = arith.constant dense<0.000000e+00> : vector<8x32xf32>
    %238 = tpu.matmul %235, %237, %cst_100 {dimension_numbers = #tpu.dot_dimension_numbers<[1], [0], [0], [1], [0, 0, 1, 1], [], []>} : vector<8x64xbf16>, vector<64x32xbf16>, vector<8x32xf32> -> vector<8x32xf32>
    %239 = vector.broadcast %130 : vector<1x32xf32> to vector<8x32xf32>
    %240 = arith.addf %238, %239 : vector<8x32xf32>
    %241 = arith.addf %193, %240 : vector<8x32xf32>
    %242 = vector.extract_strided_slice %8 {offsets = [10, 0], sizes = [1, 32], strides = [1, 1]} : vector<12x32xf32> to vector<1x32xf32>
    %243 = vector.extract_strided_slice %8 {offsets = [11, 0], sizes = [1, 32], strides = [1, 1]} : vector<12x32xf32> to vector<1x32xf32>
    %cst_101 = arith.constant dense<0.000000e+00> : vector<8xf32>
    %244 = vector.multi_reduction <add>, %241, %cst_101 [1] : vector<8x32xf32> to vector<8xf32>
    %245 = vector.shape_cast %244 : vector<8xf32> to vector<8x1xf32>
    %cst_102 = arith.constant 3.200000e+01 : f32
    %246 = vector.broadcast %cst_102 : f32 to vector<8x1xf32>
    %247 = arith.divf %245, %246 : vector<8x1xf32>
    %248 = vector.broadcast %247 : vector<8x1xf32> to vector<8x32xf32>
    %249 = arith.subf %241, %248 : vector<8x32xf32>
    %250 = arith.mulf %249, %249 : vector<8x32xf32>
    %cst_103 = arith.constant dense<0.000000e+00> : vector<8xf32>
    %251 = vector.multi_reduction <add>, %250, %cst_103 [1] : vector<8x32xf32> to vector<8xf32>
    %252 = vector.shape_cast %251 : vector<8xf32> to vector<8x1xf32>
    %cst_104 = arith.constant 3.200000e+01 : f32
    %253 = vector.broadcast %cst_104 : f32 to vector<8x1xf32>
    %254 = arith.divf %252, %253 : vector<8x1xf32>
    %255 = vector.broadcast %247 : vector<8x1xf32> to vector<8x32xf32>
    %256 = arith.subf %241, %255 : vector<8x32xf32>
    %cst_105 = arith.constant 9.99999974E-6 : f32
    %257 = vector.broadcast %cst_105 : f32 to vector<8x1xf32>
    %258 = arith.addf %254, %257 : vector<8x1xf32>
    %259 = math.rsqrt %258 : vector<8x1xf32>
    %260 = vector.broadcast %259 : vector<8x1xf32> to vector<8x32xf32>
    %261 = arith.mulf %256, %260 : vector<8x32xf32>
    %262 = vector.broadcast %242 : vector<1x32xf32> to vector<8x32xf32>
    %263 = arith.mulf %261, %262 : vector<8x32xf32>
    %264 = vector.broadcast %243 : vector<1x32xf32> to vector<8x32xf32>
    %265 = arith.addf %263, %264 : vector<8x32xf32>
    %c0_106 = arith.constant 0 : index
    %c0_107 = arith.constant 0 : index
    %c0_108 = arith.constant 0 : index
    %266 = vector.load %arg10[%c0_106, %c0_107, %c0_108] : memref<1x8x32xf32, #tpu.memory_space<vmem>>, vector<1x8x32xf32>
    %267 = vector.shape_cast %266 : vector<1x8x32xf32> to vector<8x32xf32>
    %268 = vector.shape_cast %265 : vector<8x32xf32> to vector<1x8x32xf32>
    tpu.vector_store %arg10[%c0_106, %c0_107, %c0_108], %268 {strides = array<i32>} : memref<1x8x32xf32, #tpu.memory_space<vmem>>, vector<1x8x32xf32>,
    %269 = arith.truncf %265 : vector<8x32xf32> to vector<8x32xbf16>
    %c0_109 = arith.constant 0 : index
    %c0_110 = arith.constant 0 : index
    %270 = vector.load %arg9[%c0_109, %c0_110] : memref<32x256xbf16, #tpu.memory_space<vmem>>, vector<32x256xbf16>
    %cst_111 = arith.constant dense<0.000000e+00> : vector<8x256xf32>
    %271 = tpu.matmul %269, %270, %cst_111 {dimension_numbers = #tpu.dot_dimension_numbers<[1], [0], [0], [1], [0, 0, 1, 1], [], []>} : vector<8x32xbf16>, vector<32x256xbf16>, vector<8x256xf32> -> vector<8x256xf32>
    %c0_112 = arith.constant 0 : index
    %c0_113 = arith.constant 0 : index
    %c0_114 = arith.constant 0 : index
    %272 = vector.load %arg11[%c0_112, %c0_113, %c0_114] : memref<1x8x256xf32, #tpu.memory_space<vmem>>, vector<1x8x256xf32>
    %273 = vector.shape_cast %272 : vector<1x8x256xf32> to vector<8x256xf32>
    %274 = vector.shape_cast %271 : vector<8x256xf32> to vector<1x8x256xf32>
    tpu.vector_store %arg11[%c0_112, %c0_113, %c0_114], %274 {strides = array<i32>} : memref<1x8x256xf32, #tpu.memory_space<vmem>>, vector<1x8x256xf32>,
    return
  }
  func.func @transform_0(%arg0: i32) -> (i32, i32, i32) {
    %c0_i32 = arith.constant 0 : i32
    %c0_i32_0 = arith.constant 0 : i32
    %c0_i32_1 = arith.constant 0 : i32
    return %arg0, %c0_i32, %c0_i32_0 : i32, i32, i32
  }
  func.func @transform_1(%arg0: i32) -> (i32, i32, i32) {
    %c0_i32 = arith.constant 0 : i32
    %c0_i32_0 = arith.constant 0 : i32
    %c0_i32_1 = arith.constant 0 : i32
    return %arg0, %c0_i32, %c0_i32_0 : i32, i32, i32
  }
  func.func @transform_2(%arg0: i32) -> (i32, i32, i32, i32) {
    %c0_i32 = arith.constant 0 : i32
    %c0_i32_0 = arith.constant 0 : i32
    %c0_i32_1 = arith.constant 0 : i32
    %c0_i32_2 = arith.constant 0 : i32
    %c0_i32_3 = arith.constant 0 : i32
    return %c0_i32, %c0_i32_0, %c0_i32_1, %c0_i32_2 : i32, i32, i32, i32
  }
  func.func @transform_3(%arg0: i32) -> (i32, i32, i32, i32) {
    %c0_i32 = arith.constant 0 : i32
    %c0_i32_0 = arith.constant 0 : i32
    %c0_i32_1 = arith.constant 0 : i32
    %c0_i32_2 = arith.constant 0 : i32
    %c0_i32_3 = arith.constant 0 : i32
    return %c0_i32, %c0_i32_0, %c0_i32_1, %c0_i32_2 : i32, i32, i32, i32
  }
  func.func @transform_4(%arg0: i32) -> (i32, i32, i32) {
    %c0_i32 = arith.constant 0 : i32
    %c0_i32_0 = arith.constant 0 : i32
    %c0_i32_1 = arith.constant 0 : i32
    %c0_i32_2 = arith.constant 0 : i32
    return %c0_i32, %c0_i32_0, %c0_i32_1 : i32, i32, i32
  }
  func.func @transform_5(%arg0: i32) -> (i32, i32, i32) {
    %c0_i32 = arith.constant 0 : i32
    %c0_i32_0 = arith.constant 0 : i32
    %c0_i32_1 = arith.constant 0 : i32
    %c0_i32_2 = arith.constant 0 : i32
    return %c0_i32, %c0_i32_0, %c0_i32_1 : i32, i32, i32
  }
  func.func @transform_6(%arg0: i32) -> (i32, i32) {
    %c0_i32 = arith.constant 0 : i32
    %c0_i32_0 = arith.constant 0 : i32
    %c0_i32_1 = arith.constant 0 : i32
    return %c0_i32, %c0_i32_0 : i32, i32
  }
  func.func @transform_7(%arg0: i32) -> (i32, i32) {
    %c0_i32 = arith.constant 0 : i32
    %c0_i32_0 = arith.constant 0 : i32
    %c0_i32_1 = arith.constant 0 : i32
    return %c0_i32, %c0_i32_0 : i32, i32
  }
  func.func @transform_8(%arg0: i32) -> (i32, i32) {
    %c0_i32 = arith.constant 0 : i32
    %c0_i32_0 = arith.constant 0 : i32
    %c0_i32_1 = arith.constant 0 : i32
    return %c0_i32, %c0_i32_0 : i32, i32
  }
  func.func @transform_9(%arg0: i32) -> (i32, i32, i32) {
    %c0_i32 = arith.constant 0 : i32
    %c0_i32_0 = arith.constant 0 : i32
    %c0_i32_1 = arith.constant 0 : i32
    return %arg0, %c0_i32, %c0_i32_0 : i32, i32, i32
  }
  func.func @transform_10(%arg0: i32) -> (i32, i32, i32) {
    %c0_i32 = arith.constant 0 : i32
    %c0_i32_0 = arith.constant 0 : i32
    %c0_i32_1 = arith.constant 0 : i32
    return %arg0, %c0_i32, %c0_i32_0 : i32, i32, i32
  }
}

</mosaic_0001>

<bundles_post_ra>
// kernel: _lambda_.1
= control target key start
LH: loop header
LB: loop body
LE: loop exit
PB: predicated region body
PF: predicated region fallthrough
CT: control target
= control target key end

     0   :  { %s5398_s0 = inlined_call_operand.vmem [shape: f32[2,8,32], index: 0, kind: input, shape index: {}]   ;;  %s5399_s1 = inlined_call_operand.vmem [shape: f32[2,1,8], index: 1, kind: input, shape index: {}]   ;;  %s5400_s2 = inlined_call_operand.hbm [shape: bf16[6,4,32,8], index: 2, kind: input, shape index: {}]   ;;  %s5401_s3 = inlined_call_operand.vmem [shape: bf16[2,4,8,32], index: 3, kind: input, shape index: {}]   ;;  %s5402_s4 = inlined_call_operand.vmem [shape: bf16[2,32,64], index: 4, kind: input, shape index: {}]   ;;  %s5403_s5 = inlined_call_operand.vmem [shape: bf16[2,64,32], index: 5, kind: input, shape index: {}]   ;;  %s5404_s6 = inlined_call_operand.vmem [shape: f32[12,32], index: 6, kind: input, shape index: {}]   ;;  %s5405_s7 = inlined_call_operand.vmem [shape: f32[2,64], index: 7, kind: input, shape index: {}]   ;;  %s5406_s8 = inlined_call_operand.vmem [shape: bf16[32,256], index: 8, kind: input, shape index: {}]   ;;  %s5407_s9 = inlined_call_operand.hbm [shape: f32[2,8,32], index: 9, kind: output, shape index: {0}]   ;;  %s5408_s10 = inlined_call_operand.hbm [shape: f32[2,8,256], index: 10, kind: output, shape index: {1}]  }
   0x1   :  { %5412 = sst [smem:[#allocation11_spill]] %s5398_s0 }
   0x2   :  { %16 = vsyncpa [#allocation3], 0 }
   0x3   :  { %17 = vsyncpa [#allocation4], 0 }
   0x4   :  { %19 = vsyncpa [#allocation4 + $0x1], 0 }
   0x5   :  { %20 = vsyncpa [#allocation7], 0 }
   0x6   :  { %22 = vsyncpa [#allocation7 + $0x1], 0  ;;  %s4713_s13 = smov 0   ;;  %s4715_s14 = smov 0  }
   0x7   :  { %s4717_s15 = smov 0   ;;  %s4719_s16 = smov 0  }
   0x8 LB: > { %s4734_s17 = sadd.s32 4294967295, %s4648_s16   ;;  %s3686_s18 = sadd.s32 4294967294, %s4648_s16   ;;  %s4648_s16 = sphi %s4719_s16, %s5426_s16   ;;  %s4644_s15 = sphi %s4717_s15, %s5425_s15   ;;  %s4640_s14 = sphi %s4715_s14, %s5424_s14   ;;  %s4636_s13 = sphi %s4713_s13, %s5423_s13  }
   0x9   : > { %s4738_s19 = sadd.s32 1, %s4648_s16   ;;  %s234_s20 = sadd.s32 1, %s4644_s15 }
   0xa   : > { %s231_s21 = ssub.s32 %s4648_s16, %s4738_s19  ;;  %p244_p0 = scmp.ne.s32.totalorder %s4644_s15, %s4640_s14 }
   0xb   : > { %p232_p1 = scmp.eq.s32.totalorder %s231_s21, 0  ;;  %p245_p2 = scmp.eq.s32.totalorder %s4734_s17, 1 }
   0xc   : > { %p250_p3 = scmp.ne.s32.totalorder %s4640_s14, %s4636_s13  ;;  %p251_p4 = scmp.eq.s32.totalorder %s3686_s18, 1 }
   0xd   : > { %s4749_s22 = scalar_select %p232_p1, %s4644_s15, %s234_s20  }
   0xe   : > { %p4751_p5 = por %p245_p2, %p244_p0  ;;  %p4755_p6 = por %p251_p4, %p250_p3 }
   0xf   : > { %p3687_p7 = scmp.ge.s32.totalorder %s4648_s16, 1  ;;  %p284_p8 = scmp.lt.s32.totalorder %s4648_s16, 3 }
  0x10   : > { %s5413_s23 = scalar_select %p4751_p5, 1, 0 }
  0x11   : > { %s5414_s24 = scalar_select %p4755_p6, 1, 0 }
  0x12   : > { %p5409_p9 = scmp.eq.s32.totalorder %s4734_s17, 0  ;;  %p4762_p10 = pnand %p3687_p7, %p284_p8 }
  0x13   : > { %s4650_s26 = smov [#allocation2]   ;;  %s4522_s11 = scalar_lea.hbm %s5400_s2, 6144 }
  0x14   : > { %s5415_s25 = scalar_select %p4762_p10, 1, 0 }
  0x15   : > { %s296_s27 = sshll.u32 %s4650_s26, 4  ;;  %p4357_p11 = pneg %p4762_p10  ;;  %s297_s27 = int_to_ptr.vmem [resolvable:$true] %s296_s27 }
  0x16   : > { %p4523_p13 = scmp.ne.s32.totalorder %s5400_s2, %s4522_s11  ;;  %p4529_p3 = scmp.lt.u32.totalorder %s4522_s11, %s5400_s2 }
  0x17   : > { %p4770_p12 = pnand %p5409_p9, %p4357_p11 }
  0x19   : > { %p4524_p0 = pneg %p4770_p12 }
  0x1b   : > { %p4525_p1 = pnand %p4524_p0, %p4523_p13 }
  0x1d   : > { %p4526_p2 = pneg %p4525_p1 }
  0x1f   : > { %p4531_p4 = pnand %p4529_p3, %p4526_p2 }
  0x21   : > { %4534 = shalt.err (!%p4531_p4)
}
  0x22   : > { %s4535_s26 = scalar_lea.vmem %s297_s27, 6144  ;;  %p4543_p9 = scmp.lt.s32.totalorder %s297_s27, %s297_s27 }
  0x23   : > { %p4536_p7 = scmp.ne.s32.totalorder %s297_s27, %s4535_s26  ;;  %p4544_p6 = scmp.lt.s32.totalorder %s4535_s26, %s4535_s26 }
  0x25   : > { %p4538_p8 = pnand %p4536_p7, %p4524_p0  ;;  %p4545_p5 = por %p4544_p6, %p4543_p9 }
  0x27   : > { %p4539_p11 = pneg %p4538_p8 }
  0x29   : > { %p4546_p10 = pnand %p4545_p5, %p4539_p11 }
  0x2b   : > { %4549 = shalt.err (!%p4546_p10)
}
  0x2c   : > { %s4651_s29 = smov 64   ;;  %s4652_s30 = smov 4  }
  0x2d   : > { %4360 = dma.hbm_to_vmem [thread:$0]  (!%p4770_p12), %s5400_s2, 6144, %s297_s27, [#allocation3], %s4651_s29, %s4651_s29, %s4652_s30  }
  0x2e   : > { %p5417_p13 = scmp.ne.s32.totalorder %s5415_s25, 0 }
  0x2f   : > { %p5418_p1 = scmp.eq.s32.totalorder (!%p5417_p13), %s4734_s17, 0 }
  0x30   : > { %343 = sbr.rel (%p5417_p13) target bundleno = 5215 (0x145f), region = 56 }
  0x37   : > { %4623 = dma.done.wait (%p5418_p1), [#allocation3], 6144   ;;  %p5419_p0 = pmov %p5418_p1 }
  0x38   : > { %p388_p5 = scmp.lt.s32.totalorder %s4734_s17, 1  ;;  %s5420_s0 = sld [smem:[#allocation11_spill]]  ;;  %vm403_vm0 = vcmask 261120   ;;  %v4409_v7 = vld [vmem:[#allocation2] sm:$0xff]   ;;  %v4410_v8 = vld [vmem:[#allocation2 + $0x10] sm:$0xff]   ;;  %v4653_v9 = vmov 0.0   ;;  %v418_v14 = vlaneseq }
  0x39   : > { %4625 = vsyncadd (%p5419_p0), [#allocation3], 4294961152  ;;  %3973 = vmatprep.subr.bf16.mxu0 %v4653_v9  ;;  %3981 = vmatprep.subr.bf16.mxu1 %v4653_v9  ;;  %v4411_v10 = vld [vmem:[#allocation2 + $0x8] sm:$0xff]   ;;  %v4412_v11 = vld [vmem:[#allocation2 + $0x18] sm:$0xff]   ;;  %vm4654_vm1 = vmmov 0   ;;  %vm1114_vm2 = vcmask 64512  }
  0x3a   : > { %s4798_s11 = scalar_select %p388_p5, %s4734_s17, 1  ;;  %3974 = vmatpush3.bf16.msra.mxu0 %v4409_v7  ;;  %3982 = vmatpush3.bf16.msra.mxu1 %v4410_v8  ;;  %v4820_v16 = vshrl.u32 %v418_v14, 7  ;;  %v4828_v18 = vld [vmem:[%s5404_s6] sm:$0xff]  ;;  %v4414_v27 = vld [vmem:[#allocation2 + $0x30] sm:$0xff]   ;;  %v4415_v29 = vld [vmem:[#allocation2 + $0x28] sm:$0xff]   ;;  %vm1368_vm3 = vcmask 1043456  }
  0x3b   : > { %3975 = vmatprep.subr.bf16.mxu0 %v4653_v9  ;;  %3983 = vmatprep.subr.bf16.mxu1 %v4653_v9  ;;  %v4413_v26 = vld [vmem:[#allocation2 + $0x20] sm:$0xff]   ;;  %v4416_v30 = vld [vmem:[#allocation2 + $0x38] sm:$0xff]   ;;  %v4418_v32 = vld [vmem:[#allocation2 + $0x50] sm:$0xff]   ;;  %vm1883_vm4 = vcmask 523264   ;;  %p5421_p9 = scmp.ne.s32.totalorder %s5413_s23, 0  ;;  %s4656_s30 = smov [#allocation5]  }
  0x3c   : > { %s3694_s28 = sshll.u32 %s4798_s11, 3  ;;  %3977 = vmatprep.mubr.msk.bf16.mxu0 %vm4654_vm1, %v4653_v9  ;;  %3985 = vmatprep.mubr.msk.bf16.mxu1 %vm4654_vm1, %v4653_v9  ;;  %v4823_v17 = vsub.s32 0, %v4820_v16  ;;  %v4831_v19 = vsub.s32 1, %v4820_v16  ;;  %v4417_v31 = vld [vmem:[#allocation2 + $0x40] sm:$0xff]   ;;  %v4419_v33 = vld [vmem:[#allocation2 + $0x48] sm:$0xff]   ;;  %v4420_v34 = vld [vmem:[#allocation2 + $0x58] sm:$0xff]   ;;  %s394_s12 = scalar_lea.vmem %s5399_s1, %s4798_s11 }
  0x3d   : > { %v4421_v35 = vld [vmem:[#allocation2 + $0x60] sm:$0xff]   ;;  %v4422_v36 = vld [vmem:[#allocation2 + $0x70] sm:$0xff]   ;;  %v4423_v37 = vld [vmem:[#allocation2 + $0x68] sm:$0xff]  }
  0x3e   : > { %s391_s27 = scalar_lea.vmem %s5420_s0, %s3694_s28  ;;  %3976 = vmatpush3.bf16.msra.mxu0 %v4411_v10  ;;  %3984 = vmatpush3.bf16.msra.mxu1 %v4412_v11  ;;  %v421_v20 = vrot.slane %v4828_v18, %v4823_v17  ;;  %v426_v22 = vrot.slane %v4828_v18, %v4831_v19  ;;  %v4424_v38 = vld [vmem:[#allocation2 + $0x78] sm:$0xff]   ;;  %v4425_v39 = vld [vmem:[#allocation2 + $0x80] sm:$0xff]   ;;  %v4426_v40 = vld [vmem:[#allocation2 + $0x90] sm:$0xff]   ;;  %s3831_s28 = sshll.u32 %s4734_s17, 7 }
  0x3f   : > { %v4804_v0 = vld [vmem:[%s391_s27] sm:$0xff]  ;;  %3989 = vmatprep.subr.bf16.mxu0 %v4653_v9  ;;  %3997 = vmatprep.subr.bf16.mxu1 %v4653_v9  ;;  %v4427_v41 = vld [vmem:[#allocation2 + $0x88] sm:$0xff]   ;;  %v4428_v42 = vld [vmem:[#allocation2 + $0x98] sm:$0xff]   ;;  %s5330_s27 = scalar_lea.hbm %s5407_s9, %s3831_s28 }
  0x40   : > { %v404_v1 = vsel %vm403_vm0, %v4804_v0, 0.0  ;;  %v4429_v43 = vld [vmem:[#allocation2 + $0xa0] sm:$0xff]   ;;  %v4430_v44 = vld [vmem:[#allocation2 + $0xb0] sm:$0xff]   ;;  %v4431_v45 = vld [vmem:[#allocation2 + $0xa8] sm:$0xff]  }
  0x41   : > { %405 = vadd.xlane.f32.xlu0 %v404_v1  ;;  %v4432_v46 = vld [vmem:[#allocation2 + $0xb8] sm:$0xff]  }
  0xce   : > { %v406_v2 = vpop.xlane.xlu0 %405 }
  0xcf   : > { %v408_v3 = vmul.f32 0.03125, %v406_v2 }
  0xd1   : > { %v409_v4 = vsub.f32 %v4804_v0, %v408_v3 }
  0xd3   : > { %v410_v5 = vmul.f32 %v409_v4, %v409_v4 }
  0xd5   : > { %v411_v6 = vsel %vm403_vm0, %v410_v5, 0.0 }
  0xd6   : > { %412 = vadd.xlane.f32.xlu0 %v411_v6 }
 0x163   : > { %v413_v12 = vpop.xlane.xlu0 %412 }
 0x164   : > { %v414_v13 = vmul.f32 0.03125, %v413_v12 }
 0x166   : > { %v415_v15 = vadd.f32 1e-05, %v414_v13 }
 0x168   : > { %4475 = vrsqrt.f32 %v415_v15 }
 0x172   : > { %v4476_v21 = vpop.eup %4475 }
 0x173   : > { %v417_v23 = vmul.f32 %v4476_v21, %v409_v4 }
 0x175   : > { %v422_v24 = vmul.f32 %v421_v20, %v417_v23 }
 0x177   : > { %v427_v25 = vadd.f32 %v426_v22, %v422_v24 }
 0x179   : > { %v4837_v28 = vpack.c.bf16 %v427_v25, %v427_v25 }
 0x17b   : > { %3978 = vmatmul.mubr.msk.bf16.vlgmr.msra.gmra.mrb[0].mxu0 %vm403_vm0, %v4837_v28  ;;  %3986 = vmatmul.mubr.msk.bf16.vlgmr.msra.gmra.mrb[0].mxu1 %vm403_vm0, %v4837_v28 }
 0x17c   : > { %3990 = vmatpush3.bf16.msra.mxu0 %v4413_v26  ;;  %3998 = vmatpush3.bf16.msra.mxu1 %v4414_v27 }
 0x17d   : > { %3991 = vmatprep.subr.bf16.mxu0 %v4653_v9  ;;  %3999 = vmatprep.subr.bf16.mxu1 %v4653_v9 }
 0x17e   : > { %3993 = vmatprep.mubr.msk.bf16.mxu0 %vm4654_vm1, %v4653_v9  ;;  %4001 = vmatprep.mubr.msk.bf16.mxu1 %vm4654_vm1, %v4653_v9 }
 0x180   : > { %3992 = vmatpush3.bf16.msra.mxu0 %v4415_v29  ;;  %4000 = vmatpush3.bf16.msra.mxu1 %v4416_v30 }
 0x181   : > { %4005 = vmatprep.subr.bf16.mxu0 %v4653_v9  ;;  %4013 = vmatprep.subr.bf16.mxu1 %v4653_v9 }
 0x183   : > { %3994 = vmatmul.mubr.msk.bf16.vlgmr.msra.gmra.mrb[4].mxu0 %vm403_vm0, %v4837_v28  ;;  %4002 = vmatmul.mubr.msk.bf16.vlgmr.msra.gmra.mrb[4].mxu1 %vm403_vm0, %v4837_v28 }
 0x184   : > { %4006 = vmatpush3.bf16.msra.mxu0 %v4417_v31  ;;  %4014 = vmatpush3.bf16.msra.mxu1 %v4418_v32 }
 0x185   : > { %4007 = vmatprep.subr.bf16.mxu0 %v4653_v9  ;;  %4015 = vmatprep.subr.bf16.mxu1 %v4653_v9 }
 0x186   : > { %4009 = vmatprep.mubr.msk.bf16.mxu0 %vm4654_vm1, %v4653_v9  ;;  %4017 = vmatprep.mubr.msk.bf16.mxu1 %vm4654_vm1, %v4653_v9 }
 0x188   : > { %4008 = vmatpush3.bf16.msra.mxu0 %v4419_v33  ;;  %4016 = vmatpush3.bf16.msra.mxu1 %v4420_v34 }
 0x189   : > { %4021 = vmatprep.subr.bf16.mxu0 %v4653_v9  ;;  %4029 = vmatprep.subr.bf16.mxu1 %v4653_v9 }
 0x18b   : > { %4010 = vmatmul.mubr.msk.bf16.vlgmr.msra.gmra.mrb[8].mxu0 %vm403_vm0, %v4837_v28  ;;  %4018 = vmatmul.mubr.msk.bf16.vlgmr.msra.gmra.mrb[8].mxu1 %vm403_vm0, %v4837_v28 }
 0x18c   : > { %4022 = vmatpush3.bf16.msra.mxu0 %v4421_v35  ;;  %4030 = vmatpush3.bf16.msra.mxu1 %v4422_v36 }
 0x18d   : > { %4023 = vmatprep.subr.bf16.mxu0 %v4653_v9  ;;  %4031 = vmatprep.subr.bf16.mxu1 %v4653_v9 }
 0x18e   : > { %4025 = vmatprep.mubr.msk.bf16.mxu0 %vm4654_vm1, %v4653_v9  ;;  %4033 = vmatprep.mubr.msk.bf16.mxu1 %vm4654_vm1, %v4653_v9 }
 0x190   : > { %4024 = vmatpush3.bf16.msra.mxu0 %v4423_v37  ;;  %4032 = vmatpush3.bf16.msra.mxu1 %v4424_v38 }
 0x191   : > { %4037 = vmatprep.subr.bf16.mxu0 %v4653_v9  ;;  %4045 = vmatprep.subr.bf16.mxu1 %v4653_v9 }
 0x193   : > { %4026 = vmatmul.mubr.msk.bf16.vlgmr.msra.gmra.mrb[12].mxu0 %vm403_vm0, %v4837_v28  ;;  %4034 = vmatmul.mubr.msk.bf16.vlgmr.msra.gmra.mrb[12].mxu1 %vm403_vm0, %v4837_v28 }
 0x194   : > { %4038 = vmatpush3.bf16.msra.mxu0 %v4425_v39  ;;  %4046 = vmatpush3.bf16.msra.mxu1 %v4426_v40 }
 0x195   : > { %4039 = vmatprep.subr.bf16.mxu0 %v4653_v9  ;;  %4047 = vmatprep.subr.bf16.mxu1 %v4653_v9 }
 0x196   : > { %4041 = vmatprep.mubr.msk.bf16.mxu0 %vm4654_vm1, %v4653_v9  ;;  %4049 = vmatprep.mubr.msk.bf16.mxu1 %vm4654_vm1, %v4653_v9 }
 0x198   : > { %4040 = vmatpush3.bf16.msra.mxu0 %v4427_v41  ;;  %4048 = vmatpush3.bf16.msra.mxu1 %v4428_v42 }
 0x199   : > { %4053 = vmatprep.subr.bf16.mxu0 %v4653_v9  ;;  %4061 = vmatprep.subr.bf16.mxu1 %v4653_v9 }
 0x19b   : > { %4042 = vmatmul.mubr.msk.bf16.vlgmr.msra.gmra.mrb[16].mxu0 %vm403_vm0, %v4837_v28  ;;  %4050 = vmatmul.mubr.msk.bf16.vlgmr.msra.gmra.mrb[16].mxu1 %vm403_vm0, %v4837_v28 }
 0x19c   : > { %4054 = vmatpush3.bf16.msra.mxu0 %v4429_v43  ;;  %4062 = vmatpush3.bf16.msra.mxu1 %v4430_v44 }
 0x19d   : > { %4055 = vmatprep.subr.bf16.mxu0 %v4653_v9  ;;  %4063 = vmatprep.subr.bf16.mxu1 %v4653_v9 }
 0x19e   : > { %4057 = vmatprep.mubr.msk.bf16.mxu0 %vm4654_vm1, %v4653_v9  ;;  %4065 = vmatprep.mubr.msk.bf16.mxu1 %vm4654_vm1, %v4653_v9 }
 0x1a0   : > { %4056 = vmatpush3.bf16.msra.mxu0 %v4431_v45  ;;  %4064 = vmatpush3.bf16.msra.mxu1 %v4432_v46 }
 0x1a1   : > { %4069 = vmatprep.subr.bf16.mxu0 %v4653_v9  ;;  %4075 = vmatprep.subr.bf16.mxu1 %v4653_v9 }
 0x1a3   : > { %4058 = vmatmul.mubr.msk.bf16.vlgmr.msra.gmra.mrb[20].mxu0 %vm403_vm0, %v4837_v28  ;;  %4066 = vmatmul.mubr.msk.bf16.vlgmr.msra.gmra.mrb[20].mxu1 %vm403_vm0, %v4837_v28 }
 0x1a4   : > { %4071 = vmatprep.mubr.msk.bf16.mxu0 %vm4654_vm1, %v4653_v9  ;;  %4077 = vmatprep.mubr.msk.bf16.mxu1 %vm4654_vm1, %v4653_v9 }
 0x24e   : > { %v494_v47 = vpop.f32.mrb[0].mxu0  ;;  %v546_v48 = vpop.f32.mrb[0].mxu1 }
 0x24f   : > { %v3979_v49 = vpop.f32.mrb[1].mxu0  ;;  %v3987_v50 = vpop.f32.mrb[1].mxu1  ;;  %v1106_v15 = vpack.c.bf16 %v494_v47, %v494_v47  ;;  %v1107_v20 = vpack.c.bf16 %v546_v48, %v546_v48 }
 0x250   : > { %v497_v51 = vpop.f32.mrb[2].mxu0  ;;  %v549_v52 = vpop.f32.mrb[2].mxu1 }
 0x251   : > { %v3980_v53 = vpop.f32.mrb[3].mxu0  ;;  %v3988_v54 = vpop.f32.mrb[3].mxu1 }
 0x252   : > { %v397_v53 = vld [vmem:[%s394_s12] sm:$0x1]  ;;  %s5315_s12 = sand.u32 1, %s4640_s14  }
 0x253   : > { %v3695_v54 = vadd.f32 -1.0, %v397_v53  ;;  %s3692_s18 = sshll.u32 %s5315_s12, 3  ;;  %s3542_s26 = scalar_lea.sflag [#allocation4], %s5315_s12 }
 0x254   : > { %s380_s11 = scalar_lea.vmem [#allocation5], %s3692_s18  ;;  %s4554_s18 = sshll.u32 %s4656_s30, 4  ;;  %s4555_s18 = int_to_ptr.vmem [resolvable:$false] %s4554_s18 }
 0x255   : > { %s3560_s25 = sshll.u32 %s380_s11, 4  ;;  %s4556_s0 = scalar_lea.vmem %s4555_s18, 256  ;;  %s3561_s25 = int_to_ptr.vmem [resolvable:$true] %s3560_s25 }
 0x256   : > { %v4907_v55 = vpop.f32.mrb[4].mxu0  ;;  %v4909_v56 = vpop.f32.mrb[4].mxu1  ;;  %s4550_s29 = scalar_lea.vmem %s3561_s25, 128  ;;  %p4557_p2 = scmp.lt.s32.totalorder %s3561_s25, %s4555_s18 }
 0x257   : > { %v3995_v57 = vpop.f32.mrb[5].mxu0  ;;  %v4003_v58 = vpop.f32.mrb[5].mxu1  ;;  %v1108_v33 = vpack.c.bf16 %v4907_v55, %v4907_v55  ;;  %v1109_v34 = vpack.c.bf16 %v4909_v56, %v4909_v56  ;;  %v399_v55 = vmul.f32 1e+09, %v3695_v54  ;;  %p4551_p6 = scmp.ne.s32.totalorder %s3561_s25, %s4550_s29  ;;  %p4558_p3 = scmp.lt.s32.totalorder %s4556_s0, %s4550_s29 }
 0x258   : > { %v601_v59 = vpop.f32.mrb[6].mxu0  ;;  %v653_v60 = vpop.f32.mrb[6].mxu1 }
 0x259   : > { %v3996_v61 = vpop.f32.mrb[7].mxu0  ;;  %v4004_v62 = vpop.f32.mrb[7].mxu1  ;;  %v4948_v56 = vrot.slane %v399_v55, %v4823_v17  ;;  %p4552_p10 = pnand %p4551_p6, %p5421_p9  ;;  %p4559_p4 = por %p4558_p3, %p4557_p2 }
 0x25b   : > { %p4553_p12 = pneg %p4552_p10 }
 0x25d   : > { %p4560_p7 = pnand %p4559_p4, %p4553_p12 }
 0x25e   : > { %v719_v63 = vpop.f32.mrb[8].mxu0  ;;  %v771_v1 = vpop.f32.mrb[8].mxu1 }
 0x25f   : > { %v1110_v2 = vpack.c.bf16 %v719_v63, %v719_v63  ;;  %v1111_v3 = vpack.c.bf16 %v771_v1, %v771_v1  ;;  %v4011_v4 = vpop.f32.mrb[9].mxu0  ;;  %v4019_v5 = vpop.f32.mrb[9].mxu1 }
 0x260   : > { %v722_v6 = vpop.f32.mrb[10].mxu0  ;;  %v774_v7 = vpop.f32.mrb[10].mxu1 }
 0x261   : > { %v1119_v8 = vsel %vm1114_vm2, %v1110_v2, 0  ;;  %v1165_v10 = vsel %vm1114_vm2, %v1111_v3, 0  ;;  %v4012_v11 = vpop.f32.mrb[11].mxu0  ;;  %v4020_v12 = vpop.f32.mrb[11].mxu1 }
 0x262   : > { %4070 = vmatpush3.bf16.xpose.msra.mxu0 %v1119_v8  ;;  %4076 = vmatpush3.bf16.xpose.msra.mxu1 %v1165_v10 }
 0x263   : > { %4081 = vmatprep.subr.bf16.mxu0 %v4653_v9  ;;  %4087 = vmatprep.subr.bf16.mxu1 %v4653_v9 }
 0x266   : > { %v823_v13 = vpop.f32.mrb[12].mxu0  ;;  %v875_v14 = vpop.f32.mrb[12].mxu1 }
 0x267   : > { %v1112_v21 = vpack.c.bf16 %v823_v13, %v823_v13  ;;  %v1113_v22 = vpack.c.bf16 %v875_v14, %v875_v14  ;;  %v4027_v23 = vpop.f32.mrb[13].mxu0  ;;  %v4035_v24 = vpop.f32.mrb[13].mxu1 }
 0x268   : > { %v826_v25 = vpop.f32.mrb[14].mxu0  ;;  %v878_v26 = vpop.f32.mrb[14].mxu1 }
 0x269   : > { %v1211_v27 = vsel %vm1114_vm2, %v1112_v21, 0  ;;  %v1257_v28 = vsel %vm1114_vm2, %v1113_v22, 0  ;;  %v4028_v29 = vpop.f32.mrb[15].mxu0  ;;  %v4036_v30 = vpop.f32.mrb[15].mxu1  ;;  %4072 = vmatmul.mubr.msk.bf16.vlgmr.msra.gmra.mrb[24].mxu0 %vm1114_vm2, %v1106_v15  ;;  %4078 = vmatmul.mubr.msk.bf16.vlgmr.msra.gmra.mrb[24].mxu1 %vm1114_vm2, %v1107_v20 }
 0x26a   : > { %4082 = vmatpush3.bf16.xpose.msra.mxu0 %v1211_v27  ;;  %4088 = vmatpush3.bf16.xpose.msra.mxu1 %v1257_v28 }
 0x26b   : > { %4083 = vmatprep.mubr.msk.bf16.mxu0 %vm4654_vm1, %v4653_v9  ;;  %4089 = vmatprep.mubr.msk.bf16.mxu1 %vm4654_vm1, %v4653_v9 }
 0x26c   : > { %4093 = vmatprep.subr.bf16.mxu0 %v4653_v9  ;;  %4099 = vmatprep.subr.bf16.mxu1 %v4653_v9 }
 0x26e   : > { %v944_v31 = vpop.f32.mrb[16].mxu0  ;;  %v996_v32 = vpop.f32.mrb[16].mxu1 }
 0x26f   : > { %v1361_v35 = vpack.c.bf16 %v944_v31, %v944_v31  ;;  %v1362_v36 = vpack.c.bf16 %v996_v32, %v996_v32  ;;  %v4043_v37 = vpop.f32.mrb[17].mxu0  ;;  %v4051_v38 = vpop.f32.mrb[17].mxu1 }
 0x270   : > { %v947_v39 = vpop.f32.mrb[18].mxu0  ;;  %v999_v40 = vpop.f32.mrb[18].mxu1 }
 0x271   : > { %v1370_v41 = vsel %vm1368_vm3, %v1361_v35, 0  ;;  %v1416_v42 = vsel %vm1368_vm3, %v1362_v36, 0  ;;  %v4044_v43 = vpop.f32.mrb[19].mxu0  ;;  %v4052_v44 = vpop.f32.mrb[19].mxu1  ;;  %4084 = vmatmul.mubr.msk.bf16.vlgmr.msra.gmra.mrb[28].mxu0 %vm1114_vm2, %v1108_v33  ;;  %4090 = vmatmul.mubr.msk.bf16.vlgmr.msra.gmra.mrb[28].mxu1 %vm1114_vm2, %v1109_v34 }
 0x272   : > { %4094 = vmatpush3.bf16.msra.mxu0 %v1370_v41  ;;  %4100 = vmatpush3.bf16.msra.mxu1 %v1416_v42 }
 0x273   : > { %4095 = vmatprep.mubr.msk.bf16.mxu0 %vm4654_vm1, %v4653_v9  ;;  %4105 = vmatprep.subr.bf16.mxu0 %v4653_v9 }
 0x274   : > { %4101 = vmatprep.mubr.msk.bf16.mxu1 %vm4654_vm1, %v4653_v9  ;;  %4111 = vmatprep.subr.bf16.mxu1 %v4653_v9 }
 0x276   : > { %v4939_v45 = vpop.f32.mrb[20].mxu0  ;;  %v4941_v46 = vpop.f32.mrb[20].mxu1 }
 0x277   : > { %v4059_v47 = vpop.f32.mrb[21].mxu0  ;;  %v4067_v48 = vpop.f32.mrb[21].mxu1  ;;  %v1363_v54 = vpack.c.bf16 %v4939_v45, %v4939_v45 }
 0x278   : > { %v1051_v49 = vpop.f32.mrb[22].mxu0  ;;  %v1103_v50 = vpop.f32.mrb[22].mxu1 }
 0x279   : > { %v4060_v51 = vpop.f32.mrb[23].mxu0  ;;  %v4068_v52 = vpop.f32.mrb[23].mxu1 }
 0x33c   : > { %v1155_v57 = vpop.f32.mrb[24].mxu0  ;;  %v1201_v58 = vpop.f32.mrb[24].mxu1 }
 0x33d   : > { %v1299_v59 = vmul.f32 0.35355338, %v1155_v57  ;;  %v1300_v60 = vmul.f32 0.35355338, %v1201_v58  ;;  %v4073_v61 = vpop.f32.mrb[25].mxu0  ;;  %v4079_v62 = vpop.f32.mrb[25].mxu1 }
 0x33e   : > { %v1158_v63 = vpop.f32.mrb[26].mxu0  ;;  %v1204_v1 = vpop.f32.mrb[26].mxu1 }
 0x33f   : > { %v4074_v2 = vpop.f32.mrb[27].mxu0  ;;  %v4080_v3 = vpop.f32.mrb[27].mxu1  ;;  %v1309_v4 = vadd.f32 %v4948_v56, %v1299_v59  ;;  %v1310_v5 = vadd.f32 %v4948_v56, %v1300_v60  ;;  %v1462_v59 = vsel %vm1368_vm3, %v1363_v54, 0  ;;  %v1364_v60 = vpack.c.bf16 %v4941_v46, %v4941_v46  ;;  %v1554_v46 = vld [vmem:[%s5401_s3] sm:$0xf] }
 0x341   : > { %v1313_v6 = vsel %vm1114_vm2, %v1309_v4, -inf  ;;  %v1316_v10 = vsel %vm1114_vm2, %v1310_v5, -inf  ;;  %v1508_v1 = vsel %vm1368_vm3, %v1364_v60, 0 }
 0x342   : > { %1314 = vmax.xlane.f32.xlu1 %v1313_v6 }
 0x344   : > { %v1247_v7 = vpop.f32.mrb[28].mxu0  ;;  %v1293_v8 = vpop.f32.mrb[28].mxu1 }
 0x345   : > { %v1301_v11 = vmul.f32 0.35355338, %v1247_v7  ;;  %v1302_v12 = vmul.f32 0.35355338, %v1293_v8  ;;  %v4085_v13 = vpop.f32.mrb[29].mxu0  ;;  %v4091_v14 = vpop.f32.mrb[29].mxu1 }
 0x346   : > { %v1296_v15 = vpop.f32.mrb[30].mxu1  ;;  %1317 = vmax.xlane.f32.xlu1 %v1316_v10  ;;  %v1250_v20 = vpop.f32.mrb[30].mxu0  ;;  %v1555_v7 = vld [vmem:[%s5401_s3 + $0x4] sm:$0xf]  ;;  %v1556_v10 = vld [vmem:[%s5401_s3 + $0x8] sm:$0xf] }
 0x347   : > { %v4086_v21 = vpop.f32.mrb[31].mxu0  ;;  %v4092_v22 = vpop.f32.mrb[31].mxu1  ;;  %v1312_v23 = vadd.f32 %v4948_v56, %v1302_v12  ;;  %v1311_v24 = vadd.f32 %v4948_v56, %v1301_v11  ;;  %v1608_v8 = vsel %vm1368_vm3, %v1555_v7, 0  ;;  %v1654_v14 = vsel %vm1368_vm3, %v1556_v10, 0  ;;  %v1557_v20 = vld [vmem:[%s5401_s3 + $0xc] sm:$0xf] }
 0x349   : > { %v1322_v25 = vsel %vm1114_vm2, %v1312_v23, -inf  ;;  %v1319_v26 = vsel %vm1114_vm2, %v1311_v24, -inf }
 0x34a   : > { %1323 = vmax.xlane.f32.xlu1 %v1322_v25  ;;  %1320 = vmax.xlane.f32.xlu0 %v1319_v26  ;;  %v1700_v25 = vsel %vm1368_vm3, %v1557_v20, 0 }
 0x3cf   : > { %v1315_v27 = vpop.xlane.xlu1 %1314 }
 0x3d0   : > { %v1325_v28 = vsub.f32 %v1309_v4, %v1315_v27 }
 0x3d2   : > { %v1329_v29 = vmul.f32 1.442695, %v1325_v28 }
 0x3d3   : > { %v1318_v30 = vpop.xlane.xlu1 %1317 }
 0x3d4   : > { %4477 = vpow2.f32 %v1329_v29  ;;  %v1326_v31 = vsub.f32 %v1310_v5, %v1318_v30  ;;  %v1562_v5 = vsel %vm1368_vm3, %v1554_v46, 0 }
 0x3d6   : > { %v1331_v32 = vmul.f32 1.442695, %v1326_v31 }
 0x3d7   : > { %v1324_v33 = vpop.xlane.xlu1 %1323  ;;  %v1321_v34 = vpop.xlane.xlu0 %1320 }
 0x3d8   : > { %4479 = vpow2.f32 %v1331_v32  ;;  %v1328_v35 = vsub.f32 %v1312_v23, %v1324_v33  ;;  %v1327_v36 = vsub.f32 %v1311_v24, %v1321_v34 }
 0x3da   : > { %v1335_v37 = vmul.f32 1.442695, %v1328_v35  ;;  %v1333_v38 = vmul.f32 1.442695, %v1327_v36 }
 0x3dc   : > { %4481 = vpow2.f32 %v1335_v37 }
 0x3dd   : > { %4483 = vpow2.f32 %v1333_v38 }
 0x3de   : > { %v4478_v39 = vpop.eup %4477 }
 0x3df   : > { %v1337_v40 = vsel %vm1114_vm2, %v4478_v39, 0.0 }
 0x3e0   : > { %1338 = vadd.xlane.f32.xlu0 %v1337_v40 }
 0x3e2   : > { %v4480_v41 = vpop.eup %4479 }
 0x3e3   : > { %v1340_v42 = vsel %vm1114_vm2, %v4480_v41, 0.0 }
 0x3e4   : > { %1341 = vadd.xlane.f32.xlu1 %v1340_v42 }
 0x3e6   : > { %v4482_v43 = vpop.eup %4481 }
 0x3e7   : > { %v4484_v44 = vpop.eup %4483  ;;  %v1346_v47 = vsel %vm1114_vm2, %v4482_v43, 0.0 }
 0x3e8   : > { %1347 = vadd.xlane.f32.xlu1 %v1346_v47  ;;  %v1343_v48 = vsel %vm1114_vm2, %v4484_v44, 0.0 }
 0x3e9   : > { %1344 = vadd.xlane.f32.xlu0 %v1343_v48 }
 0x46d   : > { %v1339_v49 = vpop.xlane.xlu0 %1338 }
 0x46e   : > { %4485 = vrcp.f32 %v1339_v49 }
 0x471   : > { %v1342_v50 = vpop.xlane.xlu1 %1341 }
 0x472   : > { %4487 = vrcp.f32 %v1342_v50 }
 0x475   : > { %v1348_v51 = vpop.xlane.xlu1 %1347 }
 0x476   : > { %4489 = vrcp.f32 %v1348_v51  ;;  %v1345_v52 = vpop.xlane.xlu0 %1344 }
 0x477   : > { %4491 = vrcp.f32 %v1345_v52 }
 0x478   : > { %v4486_v53 = vpop.eup %4485 }
 0x479   : > { %v1353_v55 = vmul.f32 %v4486_v53, %v4478_v39 }
 0x47b   : > { %v1357_v57 = vpack.c.bf16 %v1353_v55, %v1353_v55 }
 0x47c   : > { %v4488_v58 = vpop.eup %4487 }
 0x47d   : > { %v1354_v61 = vmul.f32 %v4488_v58, %v4480_v41  ;;  %4096 = vmatmul.mubr.msk.bf16.vlgmr.msra.gmra.mrb[32].mxu0 %vm1114_vm2, %v1357_v57 }
 0x47e   : > { %4106 = vmatpush3.bf16.msra.mxu0 %v1462_v59  ;;  %4107 = vmatprep.mubr.msk.bf16.mxu0 %vm4654_vm1, %v4653_v9 }
 0x47f   : > { %v1358_v62 = vpack.c.bf16 %v1354_v61, %v1354_v61  ;;  %4117 = vmatprep.subr.bf16.mxu0 %v4653_v9 }
 0x480   : > { %v4490_v63 = vpop.eup %4489 }
 0x481   : > { %v4492_v45 = vpop.eup %4491  ;;  %4102 = vmatmul.mubr.msk.bf16.vlgmr.msra.gmra.mrb[32].mxu1 %vm1114_vm2, %v1358_v62  ;;  %v1356_v3 = vmul.f32 %v4490_v63, %v4482_v43 }
 0x482   : > { %v1355_v2 = vmul.f32 %v4492_v45, %v4484_v44  ;;  %4112 = vmatpush3.bf16.msra.mxu1 %v1508_v1  ;;  %4113 = vmatprep.mubr.msk.bf16.mxu1 %vm4654_vm1, %v4653_v9 }
 0x483   : > { %4123 = vmatprep.subr.bf16.mxu1 %v4653_v9  ;;  %v1360_v6 = vpack.c.bf16 %v1356_v3, %v1356_v3 }
 0x484   : > { %v1359_v4 = vpack.c.bf16 %v1355_v2, %v1355_v2 }
 0x486   : > { %4108 = vmatmul.mubr.msk.bf16.vlgmr.msra.gmra.mrb[36].mxu0 %vm1114_vm2, %v1359_v4 }
 0x487   : > { %4118 = vmatpush3.bf16.msra.mxu0 %v1562_v5  ;;  %4119 = vmatprep.mubr.msk.bf16.mxu0 %vm4654_vm1, %v4653_v9 }
 0x488   : > { %4129 = vmatprep.subr.bf16.mxu0 %v4653_v9 }
 0x489   : > { %4114 = vmatmul.mubr.msk.bf16.vlgmr.msra.gmra.mrb[36].mxu1 %vm1114_vm2, %v1360_v6  ;;  %v4433_v6 = vld [vmem:[%s5402_s4] sm:$0xff]  }
 0x48a   : > { %4125 = vmatprep.mubr.msk.bf16.mxu1 %vm4654_vm1, %v4653_v9  ;;  %4124 = vmatpush3.bf16.msra.mxu1 %v1608_v8 }
 0x48b   : > { %4135 = vmatprep.subr.bf16.mxu1 %v4653_v9 }
 0x550   : > { %v1406_v11 = vpop.f32.mrb[32].mxu0 }
 0x551   : > { %v1550_v12 = vpack.c.bf16 %v1406_v11, %v1406_v11  ;;  %v4097_v13 = vpop.f32.mrb[33].mxu0  ;;  %v1765_v11 = vsub.s32 2, %v4820_v16 }
 0x552   : > { %v1409_v15 = vpop.f32.mrb[34].mxu0 }
 0x553   : > { %v4098_v21 = vpop.f32.mrb[35].mxu0  ;;  %4120 = vmatmul.mubr.msk.bf16.vlgmr.msra.gmra.mrb[40].mxu0 %vm1114_vm2, %v1550_v12  ;;  %v1770_v12 = vsub.s32 3, %v4820_v16  ;;  %v1766_v13 = vrot.slane %v4828_v18, %v1765_v11 }
 0x554   : > { %v1452_v22 = vpop.f32.mrb[32].mxu1  ;;  %4130 = vmatpush3.bf16.msra.mxu0 %v1654_v14  ;;  %4131 = vmatprep.mubr.msk.bf16.mxu0 %vm4654_vm1, %v4653_v9 }
 0x555   : > { %v1551_v23 = vpack.c.bf16 %v1452_v22, %v1452_v22  ;;  %v4103_v24 = vpop.f32.mrb[33].mxu1  ;;  %4141 = vmatprep.subr.bf16.mxu0 %v4653_v9  ;;  %v1771_v20 = vrot.slane %v4828_v18, %v1770_v12 }
 0x556   : > { %v1455_v26 = vpop.f32.mrb[34].mxu1  ;;  %v4435_v24 = vld [vmem:[%s5403_s5] sm:$0xff]  }
 0x557   : > { %v4104_v27 = vpop.f32.mrb[35].mxu1  ;;  %4126 = vmatmul.mubr.msk.bf16.vlgmr.msra.gmra.mrb[40].mxu1 %vm1114_vm2, %v1551_v23  ;;  %v4437_v26 = vld [vmem:[%s5403_s5 + $0x10] sm:$0xff]  }
 0x558   : > { %4136 = vmatpush3.bf16.msra.mxu1 %v1700_v25  ;;  %4137 = vmatprep.mubr.msk.bf16.mxu1 %vm4654_vm1, %v4653_v9  ;;  %v4436_v25 = vld [vmem:[%s5403_s5 + $0x8] sm:$0xff]   ;;  %v4438_v27 = vld [vmem:[%s5403_s5 + $0x18] sm:$0xff]  }
 0x559   : > { %v1498_v28 = vpop.f32.mrb[36].mxu0  ;;  %4149 = vmatprep.subr.bf16.mxu1 %v4653_v9 }
 0x55a   : > { %v1552_v29 = vpack.c.bf16 %v1498_v28, %v1498_v28  ;;  %v4109_v30 = vpop.f32.mrb[37].mxu0  ;;  %v5063_v28 = vld [vmem:[%s5405_s7] sm:$0x3] }
 0x55b   : > { %v1501_v31 = vpop.f32.mrb[38].mxu0 }
 0x55c   : > { %v4110_v32 = vpop.f32.mrb[39].mxu0  ;;  %4132 = vmatmul.mubr.msk.bf16.vlgmr.msra.gmra.mrb[44].mxu0 %vm1114_vm2, %v1552_v29  ;;  %v1544_v33 = vpop.f32.mrb[36].mxu1  ;;  %v1781_v29 = vrot.slane %v5063_v28, %v4823_v17 }
 0x55d   : > { %v1553_v34 = vpack.c.bf16 %v1544_v33, %v1544_v33  ;;  %v4115_v35 = vpop.f32.mrb[37].mxu1  ;;  %4145 = vmatprep.mubr.msk.bf16.mxu0 %vm4654_vm1, %v4653_v9  ;;  %4142 = vmatpush3.bf16.msra.mxu0 %v4433_v6 }
 0x55e   : > { %v1547_v36 = vpop.f32.mrb[38].mxu1  ;;  %4143 = vmatprep.subr.bf16.mxu0 %v4653_v9 }
 0x55f   : > { %v4116_v37 = vpop.f32.mrb[39].mxu1  ;;  %4138 = vmatmul.mubr.msk.bf16.vlgmr.msra.gmra.mrb[44].mxu1 %vm1114_vm2, %v1553_v34 }
 0x560   : > { %4157 = vmatprep.mubr.msk.bf16.mxu1 %vm4654_vm1, %v4653_v9  ;;  %4150 = vmatpush3.bf16.msra.mxu1 %v4435_v24  ;;  %v4449_v24 = vld [vmem:[#allocation2 + $0xf8] sm:$0xff]  }
 0x561   : > { %4151 = vmatprep.subr.bf16.mxu1 %v4653_v9 }
 0x564   : > { %4152 = vmatpush3.bf16.msra.mxu1 %v4436_v25  ;;  %v4450_v25 = vld [vmem:[#allocation2 + $0x128] sm:$0xff]  }
 0x565   : > { %4153 = vmatprep.subr.bf16.mxu1 %v4653_v9 }
 0x568   : > { %4154 = vmatpush3.bf16.msra.mxu1 %v4437_v26  ;;  %v4451_v26 = vld [vmem:[#allocation2 + $0x110] sm:$0xff]  }
 0x569   : > { %4155 = vmatprep.subr.bf16.mxu1 %v4653_v9 }
 0x56c   : > { %4156 = vmatpush3.bf16.msra.mxu1 %v4438_v27  ;;  %v4452_v27 = vld [vmem:[#allocation2 + $0x140] sm:$0xff]  }
 0x56d   : > { %4177 = vmatprep.subr.bf16.mxu1 %v4653_v9 }
 0x626   : > { %v1598_v38 = vpop.f32.mrb[40].mxu0 }
 0x627   : > { %v4121_v39 = vpop.f32.mrb[41].mxu0  ;;  %v1742_v43 = vsel %vm403_vm0, %v1598_v38, 0.0 }
 0x628   : > { %v1601_v40 = vpop.f32.mrb[42].mxu0 }
 0x629   : > { %v4122_v41 = vpop.f32.mrb[43].mxu0 }
 0x62a   : > { %v1644_v42 = vpop.f32.mrb[40].mxu1 }
 0x62b   : > { %v1743_v44 = vsel %vm403_vm0, %v1644_v42, 0.0  ;;  %v4127_v47 = vpop.f32.mrb[41].mxu1 }
 0x62c   : > { %v1744_v48 = vadd.f32 %v1743_v44, %v1742_v43  ;;  %v1647_v49 = vpop.f32.mrb[42].mxu1  ;;  %v1857_v47 = vsub.s32 4, %v4820_v16 }
 0x62d   : > { %v4128_v50 = vpop.f32.mrb[43].mxu1 }
 0x62f   : > { %v1690_v51 = vpop.f32.mrb[44].mxu0 }
 0x630   : > { %v1745_v52 = vsel %vm403_vm0, %v1690_v51, 0.0  ;;  %v4133_v53 = vpop.f32.mrb[45].mxu0 }
 0x631   : > { %v1746_v54 = vadd.f32 %v1745_v52, %v1744_v48  ;;  %v1693_v55 = vpop.f32.mrb[46].mxu0  ;;  %v1858_v48 = vrot.slane %v4828_v18, %v1857_v47 }
 0x632   : > { %v4134_v57 = vpop.f32.mrb[47].mxu0  ;;  %v1736_v58 = vpop.f32.mrb[44].mxu1 }
 0x633   : > { %v1747_v59 = vsel %vm403_vm0, %v1736_v58, 0.0  ;;  %v4139_v60 = vpop.f32.mrb[45].mxu1 }
 0x634   : > { %v1748_v61 = vadd.f32 %v1747_v59, %v1746_v54  ;;  %v1739_v62 = vpop.f32.mrb[46].mxu1 }
 0x635   : > { %v4140_v63 = vpop.f32.mrb[47].mxu1  ;;  %v4439_v62 = vld [vmem:[#allocation2 + $0xc0] sm:$0xff]  }
 0x636   : > { %v5019_v45 = vadd.f32 %v1748_v61, %v4804_v0  ;;  %v4434_v0 = vld [vmem:[%s5402_s4 + $0x8] sm:$0xff]   ;;  %v4440_v63 = vld [vmem:[#allocation2 + $0xe0] sm:$0xff]  }
 0x637   : > { %4144 = vmatpush3.bf16.msra.mxu0 %v4434_v0 }
 0x638   : > { %v1750_v1 = vsel %vm403_vm0, %v5019_v45, 0.0  ;;  %4161 = vmatprep.subr.bf16.mxu0 %v4653_v9 }
 0x639   : > { %1751 = vadd.xlane.f32.xlu0 %v1750_v1  ;;  %v4442_v1 = vld [vmem:[#allocation2 + $0xe8] sm:$0xff]  }
 0x6c6   : > { %v1752_v46 = vpop.xlane.xlu0 %1751 }
 0x6c7   : > { %v1753_v2 = vmul.f32 0.03125, %v1752_v46 }
 0x6c9   : > { %v1754_v3 = vsub.f32 %v5019_v45, %v1753_v2 }
 0x6cb   : > { %v1755_v4 = vmul.f32 %v1754_v3, %v1754_v3 }
 0x6cd   : > { %v1756_v5 = vsel %vm403_vm0, %v1755_v4, 0.0  ;;  %v1943_v4 = vsub.s32 5, %v4820_v16 }
 0x6ce   : > { %1757 = vadd.xlane.f32.xlu1 %v1756_v5  ;;  %v1948_v5 = vsub.s32 6, %v4820_v16 }
 0x6cf   : > { %v1944_v6 = vrot.slane %v4828_v18, %v1943_v4 }
 0x75b   : > { %v1758_v7 = vpop.xlane.xlu1 %1757 }
 0x75c   : > { %v1759_v8 = vmul.f32 0.03125, %v1758_v7  ;;  %v1949_v7 = vrot.slane %v4828_v18, %v1948_v5  ;;  %v4447_v18 = vld [vmem:[#allocation2 + $0xf0] sm:$0xff]  }
 0x75e   : > { %v1760_v10 = vadd.f32 1e-05, %v1759_v8 }
 0x760   : > { %4493 = vrsqrt.f32 %v1760_v10 }
 0x76a   : > { %v4494_v14 = vpop.eup %4493 }
 0x76b   : > { %v1762_v15 = vmul.f32 %v4494_v14, %v1754_v3  ;;  %v4443_v14 = vld [vmem:[#allocation2 + $0xd0] sm:$0xff]  }
 0x76d   : > { %v1767_v21 = vmul.f32 %v1766_v13, %v1762_v15  ;;  %v4444_v15 = vld [vmem:[#allocation2 + $0x100] sm:$0xff]  }
 0x76f   : > { %v1772_v22 = vadd.f32 %v1771_v20, %v1767_v21  ;;  %v4445_v21 = vld [vmem:[#allocation2 + $0xd8] sm:$0xff]  }
 0x771   : > { %v1773_v23 = vpack.c.bf16 %v1772_v22, %v1772_v22  ;;  %v4446_v22 = vld [vmem:[#allocation2 + $0x108] sm:$0xff]  }
 0x773   : > { %4146 = vmatmul.mubr.msk.bf16.vlgmr.msra.gmra.mrb[48].mxu0 %vm403_vm0, %v1773_v23  ;;  %v4448_v23 = vld [vmem:[#allocation2 + $0x120] sm:$0xff]  }
 0x774   : > { %4165 = vmatprep.mubr.msk.bf16.mxu0 %vm4654_vm1, %v4653_v9  ;;  %4162 = vmatpush3.bf16.msra.mxu0 %v4439_v62 }
 0x775   : > { %4163 = vmatprep.subr.bf16.mxu0 %v4653_v9 }
 0x846   : > { %v1831_v30 = vpop.f32.mrb[48].mxu0 }
 0x847   : > { %v1832_v31 = vadd.f32 %v1831_v30, %v1781_v29  ;;  %v4147_v32 = vpop.f32.mrb[49].mxu0  ;;  %v4453_v29 = vld [vmem:[#allocation2 + $0x118] sm:$0xff]   ;;  %v4454_v30 = vld [vmem:[#allocation2 + $0x148] sm:$0xff]  }
 0x848   : > { %v1834_v33 = vpop.f32.mrb[50].mxu0  ;;  %v4456_v32 = vld [vmem:[#allocation2 + $0x160] sm:$0xff]  }
 0x849   : > { %v1837_v34 = vmul.f32 %v1832_v31, %v1832_v31  ;;  %v4148_v35 = vpop.f32.mrb[51].mxu0  ;;  %v4457_v33 = vld [vmem:[#allocation2 + $0x138] sm:$0xff]  }
 0x84a   : > { %v4459_v35 = vld [vmem:[#allocation2 + $0x150] sm:$0xff]  }
 0x84b   : > { %v1838_v36 = vmul.f32 %v1837_v34, %v1832_v31  ;;  %v4458_v34 = vld [vmem:[#allocation2 + $0x168] sm:$0xff]  }
 0x84d   : > { %v1839_v37 = vmul.f32 0.044715, %v1838_v36  ;;  %v4460_v36 = vld [vmem:[#allocation2 + $0x158] sm:$0xff]  }
 0x84f   : > { %v1840_v38 = vadd.f32 %v1839_v37, %v1832_v31  ;;  %v4461_v37 = vld [vmem:[#allocation2 + $0x170] sm:$0xff]  }
 0x851   : > { %v1841_v39 = vmul.f32 0.7978846, %v1840_v38  ;;  %v4462_v38 = vld [vmem:[#allocation2 + $0x178] sm:$0xff]  }
 0x853   : > { %4495 = vtanh.f32 %v1841_v39 }
 0x85d   : > { %v4496_v40 = vpop.eup %4495 }
 0x85e   : > { %v1843_v41 = vadd.f32 1.0, %v4496_v40 }
 0x860   : > { %v1844_v42 = vmul.f32 0.5, %v1843_v41 }
 0x862   : > { %v1845_v43 = vmul.f32 %v1844_v42, %v1832_v31  ;;  %v4455_v31 = vld [vmem:[#allocation2 + $0x130] sm:$0xff]  }
 0x864   : > { %v1846_v44 = vpack.c.bf16 %v1845_v43, %v1845_v43 }
 0x866   : > { %4158 = vmatmul.mubr.msk.bf16.vlgmr.msra.gmra.mrb[48].mxu1 %vm1883_vm4, %v1846_v44 }
 0x867   : > { %4181 = vmatprep.mubr.msk.bf16.mxu1 %vm4654_vm1, %v4653_v9  ;;  %4178 = vmatpush3.bf16.msra.mxu1 %v4440_v63 }
 0x868   : > { %4179 = vmatprep.subr.bf16.mxu1 %v4653_v9 }
 0x86b   : > { %4180 = vmatpush3.bf16.msra.mxu1 %v4442_v1 }
 0x86c   : > { %4193 = vmatprep.subr.bf16.mxu1 %v4653_v9 }
 0x939   : > { %v1921_v49 = vpop.f32.mrb[48].mxu1 }
 0x93a   : > { %v1922_v50 = vadd.f32 %v1921_v49, %v1858_v48  ;;  %v4159_v51 = vpop.f32.mrb[49].mxu1 }
 0x93b   : > { %v1924_v52 = vpop.f32.mrb[50].mxu1 }
 0x93c   : > { %v5073_v53 = vadd.f32 %v1922_v50, %v5019_v45  ;;  %v4160_v54 = vpop.f32.mrb[51].mxu1  ;;  %v4441_v45 = vld [vmem:[#allocation2 + $0xc8] sm:$0xff]  }
 0x93d   : > { %4164 = vmatpush3.bf16.msra.mxu0 %v4441_v45 }
 0x93e   : > { %v1928_v55 = vsel %vm403_vm0, %v5073_v53, 0.0  ;;  %4169 = vmatprep.subr.bf16.mxu0 %v4653_v9 }
 0x93f   : > { %1929 = vadd.xlane.f32.xlu0 %v1928_v55 }
 0x9cc   : > { %v1930_v57 = vpop.xlane.xlu0 %1929 }
 0x9cd   : > { %v1931_v58 = vmul.f32 0.03125, %v1930_v57 }
 0x9cf   : > { %v1932_v59 = vsub.f32 %v5073_v53, %v1931_v58 }
 0x9d1   : > { %v1933_v60 = vmul.f32 %v1932_v59, %v1932_v59 }
 0x9d3   : > { %v1934_v61 = vsel %vm403_vm0, %v1933_v60, 0.0 }
 0x9d4   : > { %1935 = vadd.xlane.f32.xlu1 %v1934_v61 }
 0xa61   : > { %v1936_v46 = vpop.xlane.xlu1 %1935 }
 0xa62   : > { %v1937_v2 = vmul.f32 0.03125, %v1936_v46 }
 0xa64   : > { %v1938_v3 = vadd.f32 1e-05, %v1937_v2 }
 0xa66   : > { %4497 = vrsqrt.f32 %v1938_v3 }
 0xa70   : > { %v4498_v0 = vpop.eup %4497 }
 0xa71   : > { %v1940_v8 = vmul.f32 %v4498_v0, %v1932_v59 }
 0xa73   : > { %v1945_v10 = vmul.f32 %v1944_v6, %v1940_v8 }
 0xa75   : > { %v1950_v13 = vadd.f32 %v1949_v7, %v1945_v10 }
 0xa77   : > { %v5087_v20 = vpack.c.bf16 %v1950_v13, %v1950_v13 }
 0xa79   : > { %4166 = vmatmul.mubr.msk.bf16.vlgmr.msra.gmra.mrb[52].mxu0 %vm403_vm0, %v5087_v20  ;;  %4182 = vmatmul.mubr.msk.bf16.vlgmr.msra.gmra.mrb[52].mxu1 %vm403_vm0, %v5087_v20 }
 0xa7a   : > { %4170 = vmatpush3.bf16.msra.mxu0 %v4443_v14  ;;  %4194 = vmatpush3.bf16.msra.mxu1 %v4444_v15 }
 0xa7b   : > { %4171 = vmatprep.subr.bf16.mxu0 %v4653_v9  ;;  %4195 = vmatprep.subr.bf16.mxu1 %v4653_v9 }
 0xa7c   : > { %4173 = vmatprep.mubr.msk.bf16.mxu0 %vm4654_vm1, %v4653_v9  ;;  %4197 = vmatprep.mubr.msk.bf16.mxu1 %vm4654_vm1, %v4653_v9 }
 0xa7e   : > { %4172 = vmatpush3.bf16.msra.mxu0 %v4445_v21  ;;  %4196 = vmatpush3.bf16.msra.mxu1 %v4446_v22 }
 0xa7f   : > { %4185 = vmatprep.subr.bf16.mxu0 %v4653_v9  ;;  %4209 = vmatprep.subr.bf16.mxu1 %v4653_v9 }
 0xa81   : > { %4174 = vmatmul.mubr.msk.bf16.vlgmr.msra.gmra.mrb[56].mxu0 %vm403_vm0, %v5087_v20  ;;  %4198 = vmatmul.mubr.msk.bf16.vlgmr.msra.gmra.mrb[56].mxu1 %vm403_vm0, %v5087_v20 }
 0xa82   : > { %4186 = vmatpush3.bf16.msra.mxu0 %v4447_v18  ;;  %4210 = vmatpush3.bf16.msra.mxu1 %v4448_v23 }
 0xa83   : > { %4187 = vmatprep.subr.bf16.mxu0 %v4653_v9  ;;  %4211 = vmatprep.subr.bf16.mxu1 %v4653_v9 }
 0xa84   : > { %4189 = vmatprep.mubr.msk.bf16.mxu0 %vm4654_vm1, %v4653_v9  ;;  %4213 = vmatprep.mubr.msk.bf16.mxu1 %vm4654_vm1, %v4653_v9 }
 0xa86   : > { %4188 = vmatpush3.bf16.msra.mxu0 %v4449_v24  ;;  %4212 = vmatpush3.bf16.msra.mxu1 %v4450_v25 }
 0xa87   : > { %4201 = vmatprep.subr.bf16.mxu0 %v4653_v9  ;;  %4225 = vmatprep.subr.bf16.mxu1 %v4653_v9 }
 0xa89   : > { %4190 = vmatmul.mubr.msk.bf16.vlgmr.msra.gmra.mrb[60].mxu0 %vm403_vm0, %v5087_v20  ;;  %4214 = vmatmul.mubr.msk.bf16.vlgmr.msra.gmra.mrb[60].mxu1 %vm403_vm0, %v5087_v20 }
 0xa8a   : > { %4202 = vmatpush3.bf16.msra.mxu0 %v4451_v26  ;;  %4226 = vmatpush3.bf16.msra.mxu1 %v4452_v27 }
 0xa8b   : > { %4203 = vmatprep.subr.bf16.mxu0 %v4653_v9  ;;  %4227 = vmatprep.subr.bf16.mxu1 %v4653_v9 }
 0xa8c   : > { %4205 = vmatprep.mubr.msk.bf16.mxu0 %vm4654_vm1, %v4653_v9  ;;  %4229 = vmatprep.mubr.msk.bf16.mxu1 %vm4654_vm1, %v4653_v9 }
 0xa8e   : > { %4204 = vmatpush3.bf16.msra.mxu0 %v4453_v29  ;;  %4228 = vmatpush3.bf16.msra.mxu1 %v4454_v30 }
 0xa8f   : > { %4217 = vmatprep.subr.bf16.mxu0 %v4653_v9  ;;  %4241 = vmatprep.subr.bf16.mxu1 %v4653_v9 }
 0xa91   : > { %4206 = vmatmul.mubr.msk.bf16.vlgmr.msra.gmra.mrb[64].mxu0 %vm403_vm0, %v5087_v20  ;;  %4230 = vmatmul.mubr.msk.bf16.vlgmr.msra.gmra.mrb[64].mxu1 %vm403_vm0, %v5087_v20 }
 0xa92   : > { %4218 = vmatpush3.bf16.msra.mxu0 %v4455_v31  ;;  %4242 = vmatpush3.bf16.msra.mxu1 %v4456_v32 }
 0xa93   : > { %4219 = vmatprep.subr.bf16.mxu0 %v4653_v9  ;;  %4243 = vmatprep.subr.bf16.mxu1 %v4653_v9 }
 0xa94   : > { %4221 = vmatprep.mubr.msk.bf16.mxu0 %vm4654_vm1, %v4653_v9  ;;  %4245 = vmatprep.mubr.msk.bf16.mxu1 %vm4654_vm1, %v4653_v9 }
 0xa96   : > { %4220 = vmatpush3.bf16.msra.mxu0 %v4457_v33  ;;  %4244 = vmatpush3.bf16.msra.mxu1 %v4458_v34 }
 0xa97   : > { %4233 = vmatprep.subr.bf16.mxu0 %v4653_v9  ;;  %4257 = vmatprep.subr.bf16.mxu1 %v4653_v9 }
 0xa99   : > { %4222 = vmatmul.mubr.msk.bf16.vlgmr.msra.gmra.mrb[68].mxu0 %vm403_vm0, %v5087_v20  ;;  %4246 = vmatmul.mubr.msk.bf16.vlgmr.msra.gmra.mrb[68].mxu1 %vm403_vm0, %v5087_v20 }
 0xa9a   : > { %4234 = vmatpush3.bf16.msra.mxu0 %v4459_v35  ;;  %4237 = vmatprep.mubr.msk.bf16.mxu0 %vm4654_vm1, %v4653_v9 }
 0xa9b   : > { %4235 = vmatprep.subr.bf16.mxu0 %v4653_v9  ;;  %4259 = vmatprep.mubr.msk.bf16.mxu1 %vm4654_vm1, %v4653_v9 }
 0xa9e   : > { %4236 = vmatpush3.bf16.msra.mxu0 %v4460_v36 }
 0xa9f   : > { %4249 = vmatprep.subr.bf16.mxu0 %v4653_v9 }
 0xaa1   : > { %4238 = vmatmul.mubr.msk.bf16.vlgmr.msra.gmra.mrb[72].mxu0 %vm403_vm0, %v5087_v20 }
 0xaa2   : > { %4250 = vmatpush3.bf16.msra.mxu0 %v4461_v37  ;;  %4253 = vmatprep.mubr.msk.bf16.mxu0 %vm4654_vm1, %v4653_v9 }
 0xaa3   : > { %4251 = vmatprep.subr.bf16.mxu0 %v4653_v9 }
 0xaa6   : > { %4252 = vmatpush3.bf16.msra.mxu0 %v4462_v38 }
 0xaa7   : > { %4263 = vmatprep.subr.bf16.mxu0 %v4653_v9 }
 0xaa9   : > { %4254 = vmatmul.mubr.msk.bf16.vlgmr.msra.gmra.mrb[76].mxu0 %vm403_vm0, %v5087_v20 }
 0xaaa   : > { %4265 = vmatprep.mubr.msk.bf16.mxu0 %vm4654_vm1, %v4653_v9 }
 0xb4c   : > { %v2018_v39 = vpop.f32.mrb[52].mxu0  ;;  %v2122_v40 = vpop.f32.mrb[52].mxu1 }
 0xb4d   : > { %v4167_v41 = vpop.f32.mrb[53].mxu0  ;;  %v4183_v42 = vpop.f32.mrb[53].mxu1  ;;  %v2630_v63 = vpack.c.bf16 %v2018_v39, %v2018_v39  ;;  %v2632_v8 = vpack.c.bf16 %v2122_v40, %v2122_v40 }
 0xb4e   : > { %v2021_v43 = vpop.f32.mrb[54].mxu0  ;;  %v2125_v44 = vpop.f32.mrb[54].mxu1 }
 0xb4f   : > { %v4168_v47 = vpop.f32.mrb[55].mxu0  ;;  %v4184_v48 = vpop.f32.mrb[55].mxu1 }
 0xb54   : > { %v2070_v49 = vpop.f32.mrb[56].mxu0  ;;  %v2243_v50 = vpop.f32.mrb[56].mxu1 }
 0xb55   : > { %v2634_v51 = vpack.c.bf16 %v2243_v50, %v2243_v50  ;;  %v4175_v52 = vpop.f32.mrb[57].mxu0  ;;  %v4199_v54 = vpop.f32.mrb[57].mxu1  ;;  %v2631_v27 = vpack.c.bf16 %v2070_v49, %v2070_v49 }
 0xb56   : > { %v2073_v55 = vpop.f32.mrb[58].mxu0  ;;  %v2246_v57 = vpop.f32.mrb[58].mxu1 }
 0xb57   : > { %v2642_v58 = vsel %vm1114_vm2, %v2634_v51, 0  ;;  %v4176_v59 = vpop.f32.mrb[59].mxu0  ;;  %v4200_v60 = vpop.f32.mrb[59].mxu1 }
 0xb58   : > { %4258 = vmatpush3.bf16.xpose.msra.mxu1 %v2642_v58 }
 0xb59   : > { %4269 = vmatprep.subr.bf16.mxu1 %v4653_v9 }
 0xb5c   : > { %v2174_v61 = vpop.f32.mrb[60].mxu0  ;;  %v2347_v62 = vpop.f32.mrb[60].mxu1 }
 0xb5d   : > { %v2636_v45 = vpack.c.bf16 %v2347_v62, %v2347_v62  ;;  %v4191_v1 = vpop.f32.mrb[61].mxu0  ;;  %v4215_v46 = vpop.f32.mrb[61].mxu1  ;;  %v2633_v38 = vpack.c.bf16 %v2174_v61, %v2174_v61 }
 0xb5e   : > { %v2177_v2 = vpop.f32.mrb[62].mxu0  ;;  %v2350_v3 = vpop.f32.mrb[62].mxu1 }
 0xb5f   : > { %v2734_v4 = vsel %vm1114_vm2, %v2636_v45, 0  ;;  %v4192_v5 = vpop.f32.mrb[63].mxu0  ;;  %v4216_v6 = vpop.f32.mrb[63].mxu1  ;;  %4260 = vmatmul.mubr.msk.bf16.vlgmr.msra.gmra.mrb[72].mxu1 %vm1114_vm2, %v2630_v63 }
 0xb60   : > { %4270 = vmatpush3.bf16.xpose.msra.mxu1 %v2734_v4  ;;  %4271 = vmatprep.mubr.msk.bf16.mxu1 %vm4654_vm1, %v4653_v9 }
 0xb61   : > { %4281 = vmatprep.subr.bf16.mxu1 %v4653_v9 }
 0xb64   : > { %v2295_v0 = vpop.f32.mrb[64].mxu0  ;;  %v2468_v7 = vpop.f32.mrb[64].mxu1 }
 0xb65   : > { %v2635_v10 = vpack.c.bf16 %v2295_v0, %v2295_v0  ;;  %v2878_v13 = vpack.c.bf16 %v2468_v7, %v2468_v7  ;;  %v4207_v14 = vpop.f32.mrb[65].mxu0  ;;  %v4231_v15 = vpop.f32.mrb[65].mxu1 }
 0xb66   : > { %v2298_v20 = vpop.f32.mrb[66].mxu0  ;;  %v2471_v21 = vpop.f32.mrb[66].mxu1 }
 0xb67   : > { %v2688_v22 = vsel %vm1114_vm2, %v2635_v10, 0  ;;  %v2886_v18 = vsel %vm1368_vm3, %v2878_v13, 0  ;;  %v4208_v23 = vpop.f32.mrb[67].mxu0  ;;  %v4232_v24 = vpop.f32.mrb[67].mxu1  ;;  %4272 = vmatmul.mubr.msk.bf16.vlgmr.msra.gmra.mrb[76].mxu1 %vm1114_vm2, %v2632_v8 }
 0xb68   : > { %4264 = vmatpush3.bf16.xpose.msra.mxu0 %v2688_v22  ;;  %4282 = vmatpush3.bf16.msra.mxu1 %v2886_v18 }
 0xb69   : > { %4275 = vmatprep.subr.bf16.mxu0 %v4653_v9  ;;  %4283 = vmatprep.mubr.msk.bf16.mxu1 %vm4654_vm1, %v4653_v9 }
 0xb6a   : > { %4293 = vmatprep.subr.bf16.mxu1 %v4653_v9 }
 0xb6c   : > { %v2399_v25 = vpop.f32.mrb[68].mxu0  ;;  %v5171_v26 = vpop.f32.mrb[68].mxu1 }
 0xb6d   : > { %v2637_v29 = vpack.c.bf16 %v2399_v25, %v2399_v25  ;;  %v4223_v30 = vpop.f32.mrb[69].mxu0  ;;  %v4247_v31 = vpop.f32.mrb[69].mxu1 }
 0xb6e   : > { %v2402_v32 = vpop.f32.mrb[70].mxu0  ;;  %v2575_v33 = vpop.f32.mrb[70].mxu1 }
 0xb6f   : > { %v2780_v34 = vsel %vm1114_vm2, %v2637_v29, 0  ;;  %v4224_v35 = vpop.f32.mrb[71].mxu0  ;;  %v4248_v36 = vpop.f32.mrb[71].mxu1  ;;  %4266 = vmatmul.mubr.msk.bf16.vlgmr.msra.gmra.mrb[80].mxu0 %vm1114_vm2, %v2631_v27 }
 0xb70   : > { %4276 = vmatpush3.bf16.xpose.msra.mxu0 %v2780_v34  ;;  %4277 = vmatprep.mubr.msk.bf16.mxu0 %vm4654_vm1, %v4653_v9 }
 0xb71   : > { %4287 = vmatprep.subr.bf16.mxu0 %v4653_v9 }
 0xb74   : > { %v2520_v37 = vpop.f32.mrb[72].mxu0 }
 0xb75   : > { %v2879_v39 = vpack.c.bf16 %v2520_v37, %v2520_v37  ;;  %v4239_v40 = vpop.f32.mrb[73].mxu0 }
 0xb76   : > { %v2523_v41 = vpop.f32.mrb[74].mxu0 }
 0xb77   : > { %v2932_v42 = vsel %vm1368_vm3, %v2879_v39, 0  ;;  %v4240_v43 = vpop.f32.mrb[75].mxu0  ;;  %4278 = vmatmul.mubr.msk.bf16.vlgmr.msra.gmra.mrb[84].mxu0 %vm1114_vm2, %v2633_v38 }
 0xb78   : > { %4288 = vmatpush3.bf16.msra.mxu0 %v2932_v42  ;;  %4289 = vmatprep.mubr.msk.bf16.mxu0 %vm4654_vm1, %v4653_v9 }
 0xb79   : > { %4299 = vmatprep.subr.bf16.mxu0 %v4653_v9 }
 0xb7c   : > { %v5183_v44 = vpop.f32.mrb[76].mxu0 }
 0xb7d   : > { %v4255_v47 = vpop.f32.mrb[77].mxu0 }
 0xb7e   : > { %v2627_v48 = vpop.f32.mrb[78].mxu0  ;;  %v2880_v47 = vpack.c.bf16 %v5171_v26, %v5171_v26 }
 0xb7f   : > { %v4256_v49 = vpop.f32.mrb[79].mxu0 }
 0xc32   : > { %v2678_v50 = vpop.f32.mrb[72].mxu1 }
 0xc33   : > { %v2822_v51 = vmul.f32 0.35355338, %v2678_v50  ;;  %v4261_v52 = vpop.f32.mrb[73].mxu1  ;;  %v2978_v50 = vsel %vm1368_vm3, %v2880_v47, 0 }
 0xc34   : > { %v2681_v54 = vpop.f32.mrb[74].mxu1 }
 0xc35   : > { %v4262_v55 = vpop.f32.mrb[75].mxu1  ;;  %v2826_v57 = vadd.f32 %v2822_v51, %v4948_v56 }
 0xc37   : > { %v2830_v58 = vsel %vm1114_vm2, %v2826_v57, -inf }
 0xc38   : > { %2831 = vmax.xlane.f32.xlu0 %v2830_v58  ;;  %v2881_v58 = vpack.c.bf16 %v5183_v44, %v5183_v44  ;;  %v3796_v44 = vld [vmem:[%s5401_s3 + $0x10] sm:$0xf] }
 0xc3a   : > { %v2770_v59 = vpop.f32.mrb[76].mxu1 }
 0xc3b   : > { %v2824_v60 = vmul.f32 0.35355338, %v2770_v59  ;;  %v4273_v61 = vpop.f32.mrb[77].mxu1 }
 0xc3c   : > { %v2773_v62 = vpop.f32.mrb[78].mxu1  ;;  %v3024_v61 = vsel %vm1368_vm3, %v2881_v58, 0 }
 0xc3d   : > { %v4274_v63 = vpop.f32.mrb[79].mxu1  ;;  %v2828_v45 = vadd.f32 %v2824_v60, %v4948_v56 }
 0xc3f   : > { %v2836_v1 = vsel %vm1114_vm2, %v2828_v45, -inf }
 0xc40   : > { %2837 = vmax.xlane.f32.xlu0 %v2836_v1  ;;  %v3079_v1 = vsel %vm1368_vm3, %v3796_v44, 0 }
 0xc42   : > { %v2724_v46 = vpop.f32.mrb[80].mxu0 }
 0xc43   : > { %v2823_v2 = vmul.f32 0.35355338, %v2724_v46  ;;  %v4267_v3 = vpop.f32.mrb[81].mxu0  ;;  %v3797_v46 = vld [vmem:[%s5401_s3 + $0x14] sm:$0xf] }
 0xc44   : > { %v2727_v4 = vpop.f32.mrb[82].mxu0  ;;  %v3798_v3 = vld [vmem:[%s5401_s3 + $0x18] sm:$0xf] }
 0xc45   : > { %v4268_v5 = vpop.f32.mrb[83].mxu0  ;;  %v2827_v6 = vadd.f32 %v2823_v2, %v4948_v56  ;;  %v3125_v2 = vsel %vm1368_vm3, %v3797_v46, 0  ;;  %v4463_v46 = vld [vmem:[%s5402_s4 + $0x10] sm:$0xff]  }
 0xc47   : > { %v2833_v0 = vsel %vm1114_vm2, %v2827_v6, -inf }
 0xc48   : > { %2834 = vmax.xlane.f32.xlu1 %v2833_v0  ;;  %v3171_v0 = vsel %vm1368_vm3, %v3798_v3, 0 }
 0xc4a   : > { %v2816_v7 = vpop.f32.mrb[84].mxu0 }
 0xc4b   : > { %v2825_v8 = vmul.f32 0.35355338, %v2816_v7  ;;  %v4279_v10 = vpop.f32.mrb[85].mxu0 }
 0xc4c   : > { %v2819_v13 = vpop.f32.mrb[86].mxu0 }
 0xc4d   : > { %v4280_v14 = vpop.f32.mrb[87].mxu0  ;;  %v2829_v15 = vadd.f32 %v2825_v8, %v4948_v56 }
 0xc4f   : > { %v2839_v20 = vsel %vm1114_vm2, %v2829_v15, -inf }
 0xc50   : > { %2840 = vmax.xlane.f32.xlu1 %v2839_v20 }
 0xcc5   : > { %v2832_v21 = vpop.xlane.xlu0 %2831 }
 0xcc6   : > { %v2842_v22 = vsub.f32 %v2826_v57, %v2832_v21  ;;  %v3799_v21 = vld [vmem:[%s5401_s3 + $0x1c] sm:$0xf] }
 0xcc8   : > { %v2846_v18 = vmul.f32 1.442695, %v2842_v22 }
 0xcca   : > { %4499 = vpow2.f32 %v2846_v18 }
 0xccd   : > { %v2838_v23 = vpop.xlane.xlu0 %2837 }
 0xcce   : > { %v2844_v24 = vsub.f32 %v2828_v45, %v2838_v23 }
 0xcd0   : > { %v2850_v25 = vmul.f32 1.442695, %v2844_v24  ;;  %v3217_v24 = vsel %vm1368_vm3, %v3799_v21, 0  ;;  %v4465_v21 = vld [vmem:[%s5403_s5 + $0x20] sm:$0xff]  }
 0xcd2   : > { %4501 = vpow2.f32 %v2850_v25 }
 0xcd4   : > { %v4500_v27 = vpop.eup %4499 }
 0xcd5   : > { %v2835_v29 = vpop.xlane.xlu1 %2834  ;;  %v2854_v30 = vsel %vm1114_vm2, %v4500_v27, 0.0 }
 0xcd6   : > { %v2843_v31 = vsub.f32 %v2827_v6, %v2835_v29  ;;  %2855 = vadd.xlane.f32.xlu0 %v2854_v30 }
 0xcd8   : > { %v2848_v32 = vmul.f32 1.442695, %v2843_v31 }
 0xcda   : > { %4503 = vpow2.f32 %v2848_v32 }
 0xcdc   : > { %v4502_v56 = vpop.eup %4501 }
 0xcdd   : > { %v2841_v33 = vpop.xlane.xlu1 %2840  ;;  %v2860_v34 = vsel %vm1114_vm2, %v4502_v56, 0.0 }
 0xcde   : > { %v2845_v35 = vsub.f32 %v2829_v15, %v2841_v33  ;;  %2861 = vadd.xlane.f32.xlu0 %v2860_v34 }
 0xce0   : > { %v2852_v36 = vmul.f32 1.442695, %v2845_v35 }
 0xce2   : > { %4505 = vpow2.f32 %v2852_v36 }
 0xce4   : > { %v4504_v37 = vpop.eup %4503 }
 0xce5   : > { %v2857_v38 = vsel %vm1114_vm2, %v4504_v37, 0.0 }
 0xce6   : > { %2858 = vadd.xlane.f32.xlu1 %v2857_v38 }
 0xcec   : > { %v4506_v39 = vpop.eup %4505 }
 0xced   : > { %v2863_v40 = vsel %vm1114_vm2, %v4506_v39, 0.0 }
 0xcee   : > { %2864 = vadd.xlane.f32.xlu1 %v2863_v40 }
 0xd63   : > { %v2856_v41 = vpop.xlane.xlu0 %2855 }
 0xd64   : > { %4507 = vrcp.f32 %v2856_v41 }
 0xd6b   : > { %v2862_v42 = vpop.xlane.xlu0 %2861 }
 0xd6c   : > { %4509 = vrcp.f32 %v2862_v42 }
 0xd6e   : > { %v4508_v43 = vpop.eup %4507 }
 0xd6f   : > { %v2870_v48 = vmul.f32 %v4508_v43, %v4500_v27 }
 0xd71   : > { %v2874_v49 = vpack.c.bf16 %v2870_v48, %v2870_v48 }
 0xd73   : > { %4284 = vmatmul.mubr.msk.bf16.vlgmr.msra.gmra.mrb[80].mxu1 %vm1114_vm2, %v2874_v49  ;;  %v2859_v51 = vpop.xlane.xlu1 %2858 }
 0xd74   : > { %4294 = vmatpush3.bf16.msra.mxu1 %v2978_v50  ;;  %4511 = vrcp.f32 %v2859_v51  ;;  %4295 = vmatprep.mubr.msk.bf16.mxu1 %vm4654_vm1, %v4653_v9 }
 0xd75   : > { %4305 = vmatprep.subr.bf16.mxu1 %v4653_v9 }
 0xd76   : > { %v4510_v52 = vpop.eup %4509 }
 0xd77   : > { %v2872_v54 = vmul.f32 %v4510_v52, %v4502_v56 }
 0xd79   : > { %v2876_v55 = vpack.c.bf16 %v2872_v54, %v2872_v54 }
 0xd7b   : > { %4296 = vmatmul.mubr.msk.bf16.vlgmr.msra.gmra.mrb[84].mxu1 %vm1114_vm2, %v2876_v55  ;;  %v2865_v26 = vpop.xlane.xlu1 %2864 }
 0xd7c   : > { %4513 = vrcp.f32 %v2865_v26  ;;  %4307 = vmatprep.mubr.msk.bf16.mxu1 %vm4654_vm1, %v4653_v9  ;;  %4306 = vmatpush3.bf16.msra.mxu1 %v3079_v1 }
 0xd7d   : > { %4317 = vmatprep.subr.bf16.mxu1 %v4653_v9 }
 0xd7e   : > { %v4512_v57 = vpop.eup %4511 }
 0xd7f   : > { %v2871_v59 = vmul.f32 %v4512_v57, %v4504_v37 }
 0xd81   : > { %v2875_v60 = vpack.c.bf16 %v2871_v59, %v2871_v59 }
 0xd83   : > { %4290 = vmatmul.mubr.msk.bf16.vlgmr.msra.gmra.mrb[88].mxu0 %vm1114_vm2, %v2875_v60 }
 0xd84   : > { %4300 = vmatpush3.bf16.msra.mxu0 %v3024_v61  ;;  %4301 = vmatprep.mubr.msk.bf16.mxu0 %vm4654_vm1, %v4653_v9 }
 0xd85   : > { %4311 = vmatprep.subr.bf16.mxu0 %v4653_v9 }
 0xd86   : > { %v4514_v62 = vpop.eup %4513 }
 0xd87   : > { %v2873_v63 = vmul.f32 %v4514_v62, %v4506_v39 }
 0xd89   : > { %v2877_v45 = vpack.c.bf16 %v2873_v63, %v2873_v63 }
 0xd8b   : > { %4302 = vmatmul.mubr.msk.bf16.vlgmr.msra.gmra.mrb[92].mxu0 %vm1114_vm2, %v2877_v45 }
 0xd8c   : > { %4313 = vmatprep.mubr.msk.bf16.mxu0 %vm4654_vm1, %v4653_v9  ;;  %4312 = vmatpush3.bf16.msra.mxu0 %v3125_v2 }
 0xd8d   : > { %4323 = vmatprep.subr.bf16.mxu0 %v4653_v9 }
 0xe46   : > { %v2922_v4 = vpop.f32.mrb[80].mxu1 }
 0xe47   : > { %v3066_v5 = vpack.c.bf16 %v2922_v4, %v2922_v4  ;;  %v4285_v6 = vpop.f32.mrb[81].mxu1 }
 0xe48   : > { %v2925_v7 = vpop.f32.mrb[82].mxu1  ;;  %v5271_v6 = vld [vmem:[%s5404_s6 + $0x8] sm:$0xf] }
 0xe49   : > { %v4286_v8 = vpop.f32.mrb[83].mxu1  ;;  %4308 = vmatmul.mubr.msk.bf16.vlgmr.msra.gmra.mrb[88].mxu1 %vm1114_vm2, %v3066_v5  ;;  %v3282_v5 = vsub.s32 7, %v4820_v16 }
 0xe4a   : > { %4318 = vmatpush3.bf16.msra.mxu1 %v3171_v0  ;;  %4319 = vmatprep.mubr.msk.bf16.mxu1 %vm4654_vm1, %v4653_v9  ;;  %v4521_v0 = vld [vmem:[%s5404_s6] sm:$0xff] }
 0xe4b   : > { %4329 = vmatprep.subr.bf16.mxu1 %v4653_v9  ;;  %v3283_v7 = vrot.slane %v4521_v0, %v3282_v5 }
 0xe4e   : > { %v3014_v10 = vpop.f32.mrb[84].mxu1 }
 0xe4f   : > { %v3068_v13 = vpack.c.bf16 %v3014_v10, %v3014_v10  ;;  %v4297_v14 = vpop.f32.mrb[85].mxu1 }
 0xe50   : > { %v3017_v15 = vpop.f32.mrb[86].mxu1 }
 0xe51   : > { %v4298_v20 = vpop.f32.mrb[87].mxu1  ;;  %4320 = vmatmul.mubr.msk.bf16.vlgmr.msra.gmra.mrb[92].mxu1 %vm1114_vm2, %v3068_v13  ;;  %v3288_v13 = vrot.slane %v5271_v6, %v4823_v17  ;;  %v4467_v17 = vld [vmem:[%s5403_s5 + $0x30] sm:$0xff]  }
 0xe52   : > { %4333 = vmatprep.mubr.msk.bf16.mxu1 %vm4654_vm1, %v4653_v9  ;;  %4330 = vmatpush3.bf16.msra.mxu1 %v4463_v46 }
 0xe53   : > { %4331 = vmatprep.subr.bf16.mxu1 %v4653_v9 }
 0xe56   : > { %v2968_v22 = vpop.f32.mrb[88].mxu0 }
 0xe57   : > { %v3067_v18 = vpack.c.bf16 %v2968_v22, %v2968_v22  ;;  %v4291_v23 = vpop.f32.mrb[89].mxu0  ;;  %v4466_v22 = vld [vmem:[%s5403_s5 + $0x28] sm:$0xff]  }
 0xe58   : > { %v2971_v25 = vpop.f32.mrb[90].mxu0  ;;  %v3299_v23 = vrot.slane %v5063_v28, %v4831_v19  ;;  %v3377_v28 = vrot.slane %v5271_v6, %v4831_v19  ;;  %v4471_v19 = vld [vmem:[%s5406_s8 + $0x4] ss:$8 sps:$4 sm:$0xff]  }
 0xe59   : > { %v4292_v27 = vpop.f32.mrb[91].mxu0  ;;  %4314 = vmatmul.mubr.msk.bf16.vlgmr.msra.gmra.mrb[96].mxu0 %vm1114_vm2, %v3067_v18  ;;  %v4468_v18 = vld [vmem:[%s5403_s5 + $0x38] sm:$0xff]  }
 0xe5a   : > { %4324 = vmatpush3.bf16.msra.mxu0 %v3217_v24  ;;  %4325 = vmatprep.mubr.msk.bf16.mxu0 %vm4654_vm1, %v4653_v9 }
 0xe5b   : > { %4337 = vmatprep.subr.bf16.mxu0 %v4653_v9 }
 0xe5e   : > { %v3060_v29 = vpop.f32.mrb[92].mxu0 }
 0xe5f   : > { %v3069_v30 = vpack.c.bf16 %v3060_v29, %v3060_v29  ;;  %v4303_v31 = vpop.f32.mrb[93].mxu0 }
 0xe60   : > { %v3063_v32 = vpop.f32.mrb[94].mxu0 }
 0xe61   : > { %v4304_v56 = vpop.f32.mrb[95].mxu0  ;;  %4326 = vmatmul.mubr.msk.bf16.vlgmr.msra.gmra.mrb[100].mxu0 %vm1114_vm2, %v3069_v30 }
 0xe62   : > { %4345 = vmatprep.mubr.msk.bf16.mxu0 %vm4654_vm1, %v4653_v9  ;;  %4338 = vmatpush3.bf16.msra.mxu0 %v4465_v21 }
 0xe63   : > { %4339 = vmatprep.subr.bf16.mxu0 %v4653_v9 }
 0xe66   : > { %4340 = vmatpush3.bf16.msra.mxu0 %v4466_v22 }
 0xe67   : > { %4341 = vmatprep.subr.bf16.mxu0 %v4653_v9 }
 0xe6a   : > { %4342 = vmatpush3.bf16.msra.mxu0 %v4467_v17 }
 0xe6b   : > { %4343 = vmatprep.subr.bf16.mxu0 %v4653_v9 }
 0xe6e   : > { %4344 = vmatpush3.bf16.msra.mxu0 %v4468_v18 }
 0xf1c   : > { %v3115_v33 = vpop.f32.mrb[88].mxu1 }
 0xf1d   : > { %v4309_v34 = vpop.f32.mrb[89].mxu1  ;;  %v3259_v42 = vsel %vm403_vm0, %v3115_v33, 0.0 }
 0xf1e   : > { %v3118_v35 = vpop.f32.mrb[90].mxu1 }
 0xf1f   : > { %v4310_v36 = vpop.f32.mrb[91].mxu1 }
 0xf24   : > { %v3207_v37 = vpop.f32.mrb[92].mxu1 }
 0xf25   : > { %v4321_v38 = vpop.f32.mrb[93].mxu1  ;;  %v3262_v50 = vsel %vm403_vm0, %v3207_v37, 0.0 }
 0xf26   : > { %v3210_v39 = vpop.f32.mrb[94].mxu1 }
 0xf27   : > { %v4322_v40 = vpop.f32.mrb[95].mxu1 }
 0xf2c   : > { %v3161_v41 = vpop.f32.mrb[96].mxu0 }
 0xf2d   : > { %v3260_v43 = vsel %vm403_vm0, %v3161_v41, 0.0  ;;  %v4315_v47 = vpop.f32.mrb[97].mxu0 }
 0xf2e   : > { %v3261_v48 = vadd.f32 %v3260_v43, %v3259_v42  ;;  %v3164_v49 = vpop.f32.mrb[98].mxu0 }
 0xf2f   : > { %v4316_v51 = vpop.f32.mrb[99].mxu0 }
 0xf30   : > { %v3263_v52 = vadd.f32 %v3262_v50, %v3261_v48 }
 0xf34   : > { %v3253_v54 = vpop.f32.mrb[100].mxu0 }
 0xf35   : > { %v3264_v55 = vsel %vm403_vm0, %v3253_v54, 0.0  ;;  %v4327_v26 = vpop.f32.mrb[101].mxu0 }
 0xf36   : > { %v3265_v57 = vadd.f32 %v3264_v55, %v3263_v52  ;;  %v3256_v58 = vpop.f32.mrb[102].mxu0  ;;  %v4469_v55 = vld [vmem:[%s5406_s8] ss:$8 sps:$4 sm:$0xff]   ;;  %v4472_v26 = vld [vmem:[%s5406_s8 + $0x10] ss:$8 sps:$4 sm:$0xff]  }
 0xf37   : > { %v4328_v59 = vpop.f32.mrb[103].mxu0  ;;  %v4655_v58 = vmov 0  }
 0xf38   : > { %v5254_v60 = vadd.f32 %v3265_v57, %v5073_v53  ;;  %v4464_v53 = vld [vmem:[%s5402_s4 + $0x18] sm:$0xff]  }
 0xf39   : > { %4332 = vmatpush3.bf16.msra.mxu1 %v4464_v53  ;;  %v4474_v57 = vld [vmem:[%s5406_s8 + $0x14] ss:$8 sps:$4 sm:$0xff]  }
 0xf3a   : > { %v3267_v61 = vsel %vm403_vm0, %v5254_v60, 0.0  ;;  %3498 = vmatprep.subr.bf16.mxu1 %v4471_v19 }
 0xf3b   : > { %3268 = vadd.xlane.f32.xlu0 %v3267_v61 }
 0xfc8   : > { %v3269_v62 = vpop.xlane.xlu0 %3268 }
 0xfc9   : > { %v3270_v63 = vmul.f32 0.03125, %v3269_v62  ;;  %v3462_v62 = vrot.slane %v5271_v6, %v1765_v11 }
 0xfcb   : > { %v3271_v45 = vsub.f32 %v5254_v60, %v3270_v63 }
 0xfcd   : > { %v3272_v44 = vmul.f32 %v3271_v45, %v3271_v45 }
 0xfcf   : > { %v3273_v1 = vsel %vm403_vm0, %v3272_v44, 0.0  ;;  %v3467_v44 = vrot.slane %v5271_v6, %v1770_v12 }
 0xfd0   : > { %3274 = vadd.xlane.f32.xlu1 %v3273_v1 }
0x105d   : > { %v3275_v2 = vpop.xlane.xlu1 %3274 }
0x105e   : > { %v3276_v3 = vmul.f32 0.03125, %v3275_v2 }
0x1060   : > { %v3277_v4 = vadd.f32 1e-05, %v3276_v3 }
0x1062   : > { %4515 = vrsqrt.f32 %v3277_v4 }
0x106c   : > { %v4516_v8 = vpop.eup %4515 }
0x106d   : > { %v3279_v10 = vmul.f32 %v4516_v8, %v3271_v45 }
0x106f   : > { %v3284_v14 = vmul.f32 %v3283_v7, %v3279_v10 }
0x1071   : > { %v3289_v15 = vadd.f32 %v3288_v13, %v3284_v14 }
0x1073   : > { %v3290_v20 = vpack.c.bf16 %v3289_v15, %v3289_v15 }
0x1075   : > { %4334 = vmatmul.mubr.msk.bf16.vlgmr.msra.gmra.mrb[96].mxu1 %vm403_vm0, %v3290_v20 }
0x1076   : > { %3499 = vmatpush1.bf16.msra.mxu1 %v4469_v55  ;;  %3530 = vmatprep.mubr.bf16.mxu1 %v4655_v58 }
0x1077   : > { %3500 = vmatprep.subr.bf16.mxu1 %v4474_v57 }
0x107a   : > { %3501 = vmatpush1.bf16.msra.mxu1 %v4472_v26 }
0x1148   : > { %v3349_v24 = vpop.f32.mrb[96].mxu1 }
0x1149   : > { %v3350_v25 = vadd.f32 %v3349_v24, %v3299_v23  ;;  %v4335_v27 = vpop.f32.mrb[97].mxu1 }
0x114a   : > { %v3352_v29 = vpop.f32.mrb[98].mxu1 }
0x114b   : > { %v3355_v30 = vmul.f32 %v3350_v25, %v3350_v25  ;;  %v4336_v31 = vpop.f32.mrb[99].mxu1 }
0x114d   : > { %v3356_v32 = vmul.f32 %v3355_v30, %v3350_v25 }
0x114f   : > { %v3357_v56 = vmul.f32 0.044715, %v3356_v32 }
0x1151   : > { %v3358_v33 = vadd.f32 %v3357_v56, %v3350_v25 }
0x1153   : > { %v3359_v34 = vmul.f32 0.7978846, %v3358_v33 }
0x1155   : > { %4517 = vtanh.f32 %v3359_v34 }
0x115f   : > { %v4518_v9 = vpop.eup %4517 }
0x1160   : > { %v3361_v35 = vadd.f32 1.0, %v4518_v9 }
0x1162   : > { %v3362_v36 = vmul.f32 0.5, %v3361_v35 }
0x1164   : > { %v3363_v37 = vmul.f32 %v3362_v36, %v3350_v25 }
0x1166   : > { %v3364_v38 = vpack.c.bf16 %v3363_v37, %v3363_v37 }
0x1168   : > { %4346 = vmatmul.mubr.msk.bf16.vlgmr.msra.gmra.mrb[104].mxu0 %vm1883_vm4, %v3364_v38 }
0x123b   : > { %v3439_v39 = vpop.f32.mrb[104].mxu0 }
0x123c   : > { %v3440_v40 = vadd.f32 %v3439_v39, %v3377_v28  ;;  %v4347_v41 = vpop.f32.mrb[105].mxu0 }
0x123d   : > { %v3442_v42 = vpop.f32.mrb[106].mxu0 }
0x123e   : > { %v4348_v43 = vpop.f32.mrb[107].mxu0  ;;  %v3445_v47 = vadd.f32 %v3440_v40, %v5254_v60 }
0x1240   : > { %v3446_v48 = vsel %vm403_vm0, %v3445_v47, 0.0 }
0x1241   : > { %3447 = vadd.xlane.f32.xlu0 %v3446_v48 }
0x12ce   : > { %v3448_v49 = vpop.xlane.xlu0 %3447 }
0x12cf   : > { %v3449_v50 = vmul.f32 0.03125, %v3448_v49 }
0x12d1   : > { %v3450_v51 = vsub.f32 %v3445_v47, %v3449_v50 }
0x12d3   : > { %v3451_v52 = vmul.f32 %v3450_v51, %v3450_v51 }
0x12d5   : > { %v3452_v54 = vsel %vm403_vm0, %v3451_v52, 0.0 }
0x12d6   : > { %3453 = vadd.xlane.f32.xlu1 %v3452_v54 }
0x1363   : > { %v3454_v59 = vpop.xlane.xlu1 %3453 }
0x1364   : > { %v3455_v60 = vmul.f32 0.03125, %v3454_v59 }
0x1366   : > { %v3456_v61 = vadd.f32 1e-05, %v3455_v60 }
0x1368   : > { %4519 = vrsqrt.f32 %v3456_v61 }
0x1372   : > { %v4520_v63 = vpop.eup %4519 }
0x1373   : > { %v3458_v45 = vmul.f32 %v4520_v63, %v3450_v51 }
0x1375   : > { %v3463_v1 = vmul.f32 %v3462_v62, %v3458_v45 }
0x1377   : > { %v3468_v46 = vadd.f32 %v3467_v44, %v3463_v1 }
0x1379   : > { %v3470_v53 = vpack.c.bf16 %v3468_v46, %v3468_v46  ;;  %3469 = vst.msk [vmem:[%s380_s11] sm:$0xff] %vm403_vm0, %v3468_v46 }
0x137b   : > { %3828 = vmatmul.mubr.msk.bf16.vlgmr.msra.gmra.mrb[100].mxu1 %vm403_vm0, %v3470_v53 }
0x137c   : > { %4563 = shalt.err (!%p4560_p7)
}
0x137d   : > { %s4564_s11 = scalar_lea.hbm %s5330_s27, 128  ;;  %s4568_s21 = scalar_lea.hbm %s5407_s9, 256 }
0x137e   : > { %p4565_p8 = scmp.ne.s32.totalorder %s5330_s27, %s4564_s11  ;;  %p4569_p1 = scmp.lt.u32.totalorder %s5330_s27, %s5407_s9 }
0x137f   : > { %p4570_p0 = scmp.lt.u32.totalorder %s4568_s21, %s4564_s11  ;;  %p4572_p6 = scmp.lt.u32.totalorder %s4564_s11, %s5330_s27 }
0x1380   : > { %p4566_p11 = pnand %p4565_p8, %p5421_p9 }
0x1381   : > { %p4571_p5 = por %p4570_p0, %p4569_p1 }
0x1382   : > { %p4567_p13 = pneg %p4566_p11 }
0x1383   : > { %p4573_p10 = por %p4572_p6, %p4571_p5 }
0x1385   : > { %p4574_p12 = pnand %p4573_p10, %p4567_p13 }
0x1387   : > { %4577 = shalt.err (!%p4574_p12)
}
0x1388   : > { %4353 = dma.vmem_to_hbm [thread:$0]  (%p5421_p9), %s3561_s25, 128, %s5330_s27, %s3542_s26  }
0x1389   : > { %s3693_s0 = sshll.u32 %s5315_s12, 4  ;;  %s3836_s20 = sshll.u32 %s4734_s17, 8 }
0x138a   : > { %s387_s29 = scalar_lea.vmem [#allocation6], %s3693_s0  ;;  %s5357_s30 = scalar_lea.hbm %s5408_s10, %s3836_s20 }
0x138b   : > { %s3574_s28 = sshll.u32 %s387_s29, 4  ;;  %s3547_s27 = scalar_lea.sflag [#allocation7], %s5315_s12  ;;  %s5352_s28 = int_to_ptr.vmem [resolvable:$true] %s3574_s28 }
0x138c   : > { %s4578_s25 = scalar_lea.vmem %s5352_s28, 256  ;;  %s4657_s17 = smov [#allocation6]  }
0x138d   : > { %p4579_p2 = scmp.ne.s32.totalorder %s5352_s28, %s4578_s25  ;;  %s4582_s26 = sshll.u32 %s4657_s17, 4  ;;  %s4583_s26 = int_to_ptr.vmem [resolvable:$false] %s4582_s26 }
0x138e   : > { %s4584_s18 = scalar_lea.vmem %s4583_s26, 512  ;;  %p4585_p7 = scmp.lt.s32.totalorder %s5352_s28, %s4583_s26 }
0x138f   : > { %p4580_p3 = pnand %p4579_p2, %p5421_p9  ;;  %p4586_p8 = scmp.lt.s32.totalorder %s4584_s18, %s4578_s25 }
0x1391   : > { %p4581_p4 = pneg %p4580_p3  ;;  %p4587_p11 = por %p4586_p8, %p4585_p7 }
0x1393   : > { %p4588_p13 = pnand %p4587_p11, %p4581_p4 }
0x144e   : > { %v3532_v16 = vpop.f32.mrb[100].mxu1 }
0x144f   : > { %3539 = vst [vmem:[%s387_s29] sm:$0xff] %v3532_v16  ;;  %v3534_v11 = vpop.f32.mrb[101].mxu1 }
0x1450   : > { %3540 = vst [vmem:[%s387_s29 + $0x8] sm:$0xff] %v3534_v11  ;;  %v3536_v12 = vpop.f32.mrb[102].mxu1 }
0x1451   : > { %v3537_v2 = vpop.f32.mrb[103].mxu1 }
0x1452   : > { %4591 = shalt.err (!%p4588_p13)
}
0x1453   : > { %s4592_s12 = scalar_lea.hbm %s5357_s30, 256  ;;  %s4596_s20 = scalar_lea.hbm %s5408_s10, 512 }
0x1454   : > { %p4593_p1 = scmp.ne.s32.totalorder %s5357_s30, %s4592_s12  ;;  %p4597_p6 = scmp.lt.u32.totalorder %s5357_s30, %s5408_s10 }
0x1455   : > { %p4598_p10 = scmp.lt.u32.totalorder %s4596_s20, %s4592_s12  ;;  %p4600_p2 = scmp.lt.u32.totalorder %s4592_s12, %s5357_s30 }
0x1456   : > { %p4594_p0 = pnand %p4593_p1, %p5421_p9 }
0x1457   : > { %p4599_p12 = por %p4598_p10, %p4597_p6 }
0x1458   : > { %p4595_p5 = pneg %p4594_p0 }
0x1459   : > { %p4601_p3 = por %p4600_p2, %p4599_p12 }
0x145b   : > { %p4602_p4 = pnand %p4601_p3, %p4595_p5 }
0x145d   : > { %4605 = shalt.err (!%p4602_p4)
}
0x145e   : > { %4354 = dma.vmem_to_hbm [thread:$0]  (%p5421_p9), %s5352_s28, 256, %s5357_s30, %s3547_s27  }
0x145f PF: > { %p4370_p7 = scmp.ge.s32.totalorder %s4648_s16, 2  ;;  %s3586_s25 = sand.u32 1, %s4636_s13  }
0x1460   : > { %p5422_p8 = scmp.ne.s32.totalorder %s5414_s24, 0  ;;  %s3587_s17 = scalar_lea.sflag [#allocation4], %s3586_s25 }
0x1462   : > { %p4362_p11 = pnand %p4370_p7, %p5422_p8 }
0x1464   : > { %4627 = dma.done.wait (!%p4362_p11), %s3587_s17, 128  }
0x1465   : > { %4629 = vsyncadd (!%p4362_p11), %s3587_s17, 4294967168  ;;  %s3596_s26 = scalar_lea.sflag [#allocation7], %s3586_s25 }
0x1466   : > { %4631 = dma.done.wait (!%p4362_p11), %s3596_s26, 256  }
0x1467   : > { %4633 = vsyncadd (!%p4362_p11), %s3596_s26, 4294967040  ;;  %p25_p9 = scmp.ge.s32.totalorder %s4738_s19, 4   ;;  %s5423_s13 = smov %s4640_s14 }
0x1468   : > { %s5424_s14 = smov %s4644_s15  ;;  %s5425_s15 = smov %s4749_s22 }
0x1469   : > { %s5426_s16 = smov %s4738_s19  ;;  %27 = sbr.rel (!%p25_p9) target bundleno = 8 (0x8), region = 124 }
0x1470   :  { %3601 = vsyncpa [#allocation3], 1 }
0x1471   :  { %3603 = vsyncpa [#allocation3 + $0x1], 1 }
0x1472   :  { %3604 = vsyncpa [#allocation4], 1 }
0x1473   :  { %3606 = vsyncpa [#allocation4 + $0x1], 1 }
0x1474   :  { %3607 = vsyncpa [#allocation7], 1 }
0x1475   :  { %3609 = vsyncpa [#allocation7 + $0x1], 1 }

</bundles_post_ra>
